<compile_context>
chip_gen: v7x
topology: tpu7x:2x2x1
jax: 0.10.0
libtpu: 0.0.40
codegen_flags: <defaults>
</compile_context>

<pallas_src>
import functools
from types import SimpleNamespace

import jax
import jax.numpy as jnp
from jax.experimental import pallas as pl
from jax.experimental.pallas import tpu as pltpu

_C_HEAD = 1280            # cls_pred_branch channel width
_GROUPS = 32              # GroupNorm groups
_CG = _C_HEAD // _GROUPS  # 40 channels per group
_GN_EPS = 1e-5


@functools.lru_cache(maxsize=1)
def _tpu_generation():
    """Best-effort TPU generation detection (used only for tile-size gating)."""
    try:
        kind = jax.devices()[0].device_kind.lower()
    except Exception:
        return 6
    if "v7" in kind or "tpu7" in kind or "7x" in kind:
        return 7
    if "v6" in kind:
        return 6
    if "v5" in kind:
        return 5
    return 6


# ----------------------------- Pallas kernels ------------------------------

def _matmul_bias_kernel(a_ref, b_ref, scale_ref, bias_ref, o_ref, *, tk):
    """Tiled matmul with int8-stored weights.

    A (bf16 activations) is a single VMEM-resident block spanning all of K
    (constant index_map, sliced in-kernel with pl.ds). The int8 weight streams
    in (tk, tn) tiles and is dequantised to bf16 in-kernel (MXU operands are
    always bf16 -> f32 accumulate, so this works on v5e/v6e/v7x alike).
    The per-output-channel scale + bias are applied in the epilogue.
    The f32 output block is the accumulator (index_map ignores k).
    grid = (N//tn, K//tk), k innermost / "arbitrary".
    """
    k = pl.program_id(1)

    @pl.when(k == 0)
    def _():
        o_ref[...] = jnp.zeros_like(o_ref)

    a_blk = a_ref[:, pl.ds(pl.multiple_of(k * tk, tk), tk)]
    o_ref[...] += jnp.dot(a_blk, b_ref[...].astype(jnp.bfloat16),
                          preferred_element_type=jnp.float32)

    @pl.when(k == pl.num_programs(1) - 1)
    def _():
        o_ref[...] = o_ref[...] * scale_ref[...] + bias_ref[...]


def _gn_silu_kernel(x_ref, gamma_ref, beta_ref, gm_ref, gmt_ref, o_ref, *,
                    n_norm):
    """GroupNorm + SiLU on one batch item in NHWC-flattened layout.

    x_ref: (OH*OW, C) f32 rows for one image. Per-group statistics are formed
    with a (C, G) one-hot reduce matrix and broadcast back with its (G, C)
    transpose -- no full-size gamma/beta materialisation, no layout change.
    Live ranges are kept tight (x is overwritten through the chain).
    Output is stored bf16 (it feeds the next MXU matmul directly).
    """
    x = x_ref[...]
    gm = gm_ref[...]
    gmt = gmt_ref[...]
    colsum = jnp.sum(x, axis=0, keepdims=True)                        # (1, C)
    mean_c = jnp.dot(
        jnp.dot(colsum, gm, preferred_element_type=jnp.float32) / n_norm,
        gmt, preferred_element_type=jnp.float32)                      # (1, C)
    x = x - mean_c                                                    # d
    var_g = jnp.dot(jnp.sum(x * x, axis=0, keepdims=True), gm,
                    preferred_element_type=jnp.float32) / n_norm      # (1, G)
    x = x * jnp.dot(jax.lax.rsqrt(var_g + _GN_EPS), gmt,
                    preferred_element_type=jnp.float32)               # normed
    x = x * gamma_ref[...] + beta_ref[...]
    o_ref[...] = (x * jax.nn.sigmoid(x)).astype(o_ref.dtype)


def _gn_silu_head_kernel(x_ref, gamma_ref, beta_ref, gm_ref, gmt_ref,
                         w3_ref, b3_ref, logits_ref, loss_ref, sig_ref, *,
                         n_norm, n_real):
    """Second GroupNorm + SiLU (1x1 spatial) fused with the final 1280->1 conv
    (VPU dot) AND the scalar classifier losses, so no extra launches follow.

    n_real == 0  -> generator turn:  loss = softplus(-logits).mean()
    n_real  > 0  -> guidance turn (rows [0:n_real] real, rest fake):
                    loss = softplus(-logits_real).mean()
                           + softplus(logits_fake).mean()
    """
    x = x_ref[...]                                                    # (B, C)
    gm = gm_ref[...]
    gmt = gmt_ref[...]
    mean_c = jnp.dot(
        jnp.dot(x, gm, preferred_element_type=jnp.float32) / n_norm,
        gmt, preferred_element_type=jnp.float32)                      # (B, C)
    x = x - mean_c
    var_g = jnp.dot(x * x, gm, preferred_element_type=jnp.float32) / n_norm
    x = x * jnp.dot(jax.lax.rsqrt(var_g + _GN_EPS), gmt,
                    preferred_element_type=jnp.float32)
    x = x * gamma_ref[...] + beta_ref[...]
    x = x * jax.nn.sigmoid(x)
    logits = jnp.sum(x * w3_ref[...], axis=-1, keepdims=True) + b3_ref[...]
    logits_ref[...] = logits                                          # (B, 1)
    sig_ref[...] = jax.nn.sigmoid(logits)
    if n_real == 0:
        loss_ref[...] = jnp.mean(jnp.logaddexp(0.0, -logits),
                                 axis=(0, 1), keepdims=True)
    else:
        n_fake = logits.shape[0] - n_real
        row = jax.lax.broadcasted_iota(jnp.int32, logits.shape, 0)
        is_real = row < n_real
        sp_real = jnp.where(is_real, jnp.logaddexp(0.0, -logits), 0.0)
        sp_fake = jnp.where(is_real, 0.0, jnp.logaddexp(0.0, logits))
        loss_ref[...] = (
            jnp.sum(sp_real, axis=(0, 1), keepdims=True) / float(n_real)
            + jnp.sum(sp_fake, axis=(0, 1), keepdims=True) / float(n_fake))


def _add_noise_kernel(x_ref, n_ref, a_ref, s_ref, o_ref):
    # DDIM add_noise: sqrt(acp[t]) * x + sqrt(1 - acp[t]) * noise
    o_ref[...] = a_ref[...] * x_ref[...] + s_ref[...] * n_ref[...]


def _dm_fused_kernel(lat_ref, noisy_ref, fake_eps_ref, real_u_ref, real_t_ref,
                     a_ref, s_ref,
                     xr_ref, xf_ref, grad_ref, loss_ref, gnorm_ref, *,
                     cfg_scale):
    """Fused: CFG combine (real) + x0-from-noise (real & fake) + DMD grad,
    0.5*mse loss and gradient norm -- one launch over (B, C*H*W) rows."""
    lat = lat_ref[...]
    noisy = noisy_ref[...]
    a = a_ref[...]
    s = s_ref[...]
    fake_eps = fake_eps_ref[...]
    u = real_u_ref[...]
    real_eps = u + cfg_scale * (real_t_ref[...] - u)
    # TODO(synk): reference computes x0 in float64; float32 on TPU.
    x_fake = (noisy - s * fake_eps) / a
    x_real = (noisy - s * real_eps) / a
    xr_ref[...] = x_real
    xf_ref[...] = x_fake
    p_real = lat - x_real
    p_fake = lat - x_fake
    # Note: denom can be 0 only if latents == x_real exactly; the nan_to_num
    # clamp below matches torch semantics in that degenerate case.
    denom = jnp.mean(jnp.abs(p_real), axis=-1, keepdims=True)
    grad = (p_real - p_fake) / denom
    grad = jnp.where(jnp.isnan(grad), 0.0, grad)
    big = jnp.finfo(jnp.float32).max
    grad = jnp.clip(grad, -big, big)
    grad_ref[...] = grad
    g2 = grad * grad
    # 0.5 * mse(latents, latents - grad) == 0.5 * mean(grad^2)
    loss_ref[...] = 0.5 * jnp.mean(g2, axis=(0, 1), keepdims=True)
    gnorm_ref[...] = jnp.sqrt(jnp.sum(g2, axis=(0, 1), keepdims=True))


def _fake_loss_kernel(noisy_ref, eps_ref, noise_ref, a_ref, s_ref,
                      x0_ref, loss_ref):
    """Fused: x0-from-noise + MSE(eps, noise) for the fake-unet loss."""
    noisy = noisy_ref[...]
    eps = eps_ref[...]
    # TODO(synk): reference computes x0 in float64; float32 on TPU.
    x0_ref[...] = (noisy - s_ref[...] * eps) / a_ref[...]
    d = eps - noise_ref[...]
    loss_ref[...] = jnp.mean(d * d, axis=(0, 1), keepdims=True)


# ------------------------------- JAX glue -----------------------------------

def _quantize_int8_per_col(w_mat):
    """w_mat: (K, N) f32 -> (int8 (K, N), f32 scale (1, N))."""
    amax = jnp.max(jnp.abs(w_mat), axis=0, keepdims=True)
    scale = jnp.maximum(amax, 1e-8) / 127.0
    wq = jnp.clip(jnp.round(w_mat / scale), -127, 127).astype(jnp.int8)
    return wq, scale.astype(jnp.float32)


def matmul_bias(a, w_q, w_scale, bias, tn=640, tk=None):
    """a:(M,K) (cast to bf16), w_q:(K,N) int8, w_scale:(1,N) f32,
    bias:(N,) f32 -> (M,N) f32 = (a @ dequant(w_q)) + bias."""
    gen = _tpu_generation()
    if tk is None:
        # v7x: ~3.2 TB/s makes the per-grid-step overhead visible -> 2 k-steps.
        tk = 10240 if gen >= 7 else 4096
    vmem_limit = (48 if gen >= 7 else 32) * 1024 * 1024
    a = a.astype(jnp.bfloat16)
    M, K = a.shape
    Kb, N = w_q.shape
    assert K == Kb and N % tn == 0 and K % tk == 0, (M, K, N, tn, tk)
    grid = (N // tn, K // tk)
    return pl.pallas_call(
        functools.partial(_matmul_bias_kernel, tk=tk),
        out_shape=jax.ShapeDtypeStruct((M, N), jnp.float32),
        grid_spec=pltpu.PrefetchScalarGridSpec(
            num_scalar_prefetch=0,
            grid=grid,
            in_specs=[
                # A resident in VMEM (fetched once: constant block index).
                pl.BlockSpec((M, K), lambda n, k: (0, 0)),
                # int8 weight stream: big lane-dense tiles, few grid steps.
                pl.BlockSpec((tk, tn), lambda n, k: (k, n)),
                pl.BlockSpec((1, tn), lambda n, k: (0, n)),   # per-col scale
                pl.BlockSpec((1, tn), lambda n, k: (0, n)),   # bias
            ],
            # Output block is the accumulator (resident across k).
            out_specs=pl.BlockSpec((M, tn), lambda n, k: (0, n)),
        ),
        compiler_params=pltpu.CompilerParams(
            dimension_semantics=("parallel", "arbitrary"),
            vmem_limit_bytes=vmem_limit),
    )(a, w_q, w_scale, bias.reshape(1, N))


def im2col_nhwc(x, k, s, p):
    """x: (B, H, W, C) NHWC -> (B*OH*OW, K*K*C) patches, col order (kh, kw, c).
    Keeps the input dtype (pass bf16 in so the patch matrix is built in bf16)."""
    B, H, W, C = x.shape
    if p > 0:
        x = jnp.pad(x, ((0, 0), (p, p), (p, p), (0, 0)))
    OH = (H + 2 * p - k) // s + 1
    OW = (W + 2 * p - k) // s + 1
    patches = []
    for i in range(k):
        for j in range(k):
            patches.append(x[:, i:i + s * OH:s, j:j + s * OW:s, :])
    cols = jnp.stack(patches, axis=3)                  # (B, OH, OW, k*k, C)
    cols = cols.reshape(B * OH * OW, k * k * C)
    return cols, OH, OW


class SDGuidance:
    def __init__(self, args, key):
        self.args = args
        # DDIM scheduler (SD "scaled_linear" betas) computed analytically.
        betas = jnp.linspace(0.00085 ** 0.5, 0.012 ** 0.5,
                             args.num_train_timesteps, dtype=jnp.float32) ** 2
        self.alphas_cumprod = jnp.cumprod(1.0 - betas)
        self.num_train_timesteps = args.num_train_timesteps
        self.min_step = int(args.min_step_percent * args.num_train_timesteps)
        self.max_step = int(args.max_step_percent * args.num_train_timesteps)
        self.real_guidance_scale = args.real_guidance_scale
        self.fake_guidance_scale = args.fake_guidance_scale
        assert self.fake_guidance_scale == 1, "no guidance for fake"
        self.diffusion_gan = args.diffusion_gan
        self.diffusion_gan_max_timestep = args.diffusion_gan_max_timestep

        # TODO(synk): real_unet / fake_unet (UNet2DConditionModel + LoRA adapters,
        # conv_in/conv_out 64x channel repeats) are not implemented in Pallas;
        # their forwards are deterministic stubs below.

        # cls_pred_branch parameters:
        #   Conv2d(1280->1280,k4,s2,p1) GN(32) SiLU
        #   Conv2d(1280->1280,k4,s4,p0) GN(32) SiLU
        #   Conv2d(1280->1,k1)
        k1, k2, k3, k4, k5, k6 = jax.random.split(key, 6)

        def conv_init(kk, cout, cin, ksz):
            bound = 1.0 / (cin * ksz * ksz) ** 0.5
            return jax.random.uniform(kk, (cout, cin, ksz, ksz), jnp.float32,
                                      -bound, bound)

        w1 = conv_init(k1, _C_HEAD, _C_HEAD, 4)
        w2 = conv_init(k3, _C_HEAD, _C_HEAD, 4)
        w3 = conv_init(k5, 1, _C_HEAD, 1)
        self.b1 = jax.random.uniform(k2, (_C_HEAD,), jnp.float32, -0.01, 0.01)
        self.b2 = jax.random.uniform(k4, (_C_HEAD,), jnp.float32, -0.01, 0.01)
        self.b3 = jax.random.uniform(k6, (1,), jnp.float32, -0.01, 0.01)
        # im2col operands in NHWC column order (KH, KW, Cin, Cout). Stored as
        # int8 + per-output-channel f32 scales (storage-only quantisation; the
        # matmul kernel dequantises the tile to bf16 before the MXU dot). This
        # halves the dominant HBM weight stream of the classifier head.
        w1_mat = jnp.transpose(w1, (2, 3, 1, 0)).reshape(
            4 * 4 * _C_HEAD, _C_HEAD)
        w2_mat = jnp.transpose(w2, (2, 3, 1, 0)).reshape(
            4 * 4 * _C_HEAD, _C_HEAD)
        self.w1_q, self.w1_scale = _quantize_int8_per_col(w1_mat)
        self.w2_q, self.w2_scale = _quantize_int8_per_col(w2_mat)
        self.w3_vec = w3.reshape(1, _C_HEAD)            # f32, fused VPU dot
        # GroupNorm affine params (PyTorch default init: ones / zeros).
        self.g1 = jnp.ones((_C_HEAD,), jnp.float32)
        self.bt1 = jnp.zeros((_C_HEAD,), jnp.float32)
        self.g2 = jnp.ones((_C_HEAD,), jnp.float32)
        self.bt2 = jnp.zeros((_C_HEAD,), jnp.float32)
        # One-hot group reduce matrix (C, G) and its transpose for GroupNorm in
        # the NHWC layout (channels are contiguous per group, as in PyTorch).
        ch = jnp.arange(_C_HEAD, dtype=jnp.int32)
        gm = (ch[:, None] // _CG == jnp.arange(_GROUPS,
                                               dtype=jnp.int32)[None, :])
        self.gm = gm.astype(jnp.float32)
        self.gmt = jnp.transpose(self.gm)

    # ------------------------- UNet stubs -------------------------

    def _real_unet(self, noisy, timesteps, embeddings):
        # TODO(synk): diffusers UNet2DConditionModel forward not translated; stub.
        scale = 0.2 + 0.01 * jnp.mean(embeddings, axis=(1, 2))
        return scale.reshape(-1, 1, 1, 1) * noisy

    def _fake_unet(self, noisy, timesteps, embeddings):
        # TODO(synk): diffusers UNet2DConditionModel (+LoRA) forward not translated; stub.
        scale = 0.1 + 0.01 * jnp.mean(embeddings, axis=(1, 2))
        return scale.reshape(-1, 1, 1, 1) * noisy

    def _fake_unet_classify(self, image, timesteps, embeddings):
        # TODO(synk): classify_forward mid-block feature tap not translated; returns
        # a deterministic (B, 1280, H, W) representation derived from the image.
        return jnp.tile(image, (1, _C_HEAD // image.shape[1], 1, 1)) * 0.5

    # ------------------------- scheduler helpers -------------------------

    def _acp_factors(self, timesteps, B):
        acp = self.alphas_cumprod[timesteps]
        a = jnp.sqrt(acp).reshape(B, 1).astype(jnp.float32)
        s = jnp.sqrt(1.0 - acp).reshape(B, 1).astype(jnp.float32)
        return a, s

    def _add_noise(self, latents, noise, timesteps):
        B = latents.shape[0]
        a, s = self._acp_factors(timesteps, B)
        out = pl.pallas_call(
            _add_noise_kernel,
            out_shape=jax.ShapeDtypeStruct((B, latents.size // B), jnp.float32),
        )(latents.reshape(B, -1), noise.reshape(B, -1), a, s)
        return out.reshape(latents.shape)

    def _predict_noise_parts(self, unet_fn, noisy, text_emb, uncond_emb,
                             timesteps, guidance_scale):
        """Returns (uncond_pred, text_pred, scale) such that the CFG-combined
        prediction is uncond + scale*(text - uncond). For scale<=1 both halves
        are the direct prediction (combine is a no-op)."""
        if guidance_scale > 1:
            model_input = jnp.concatenate([noisy] * 2, axis=0)
            emb = jnp.concatenate([uncond_emb, text_emb], axis=0)
            ts2 = jnp.concatenate([timesteps] * 2, axis=0)
            pred = unet_fn(model_input, ts2, emb)
            u, t = jnp.split(pred, 2, axis=0)
            return u, t, float(guidance_scale)
        pred = unet_fn(noisy, timesteps, text_emb)
        return pred, pred, 1.0

    # ------------------------- classifier branch -------------------------

    def _gn1_silu(self, y_flat, B, ohw):
        """GroupNorm+SiLU on (B*ohw, C) NHWC rows; bf16 output feeds conv2."""
        return pl.pallas_call(
            functools.partial(_gn_silu_kernel, n_norm=float(ohw * _CG)),
            out_shape=jax.ShapeDtypeStruct(y_flat.shape, jnp.bfloat16),
            grid_spec=pltpu.PrefetchScalarGridSpec(
                num_scalar_prefetch=0,
                grid=(B,),
                in_specs=[
                    pl.BlockSpec((ohw, _C_HEAD), lambda b: (b, 0)),
                    pl.BlockSpec((1, _C_HEAD), lambda b: (0, 0)),
                    pl.BlockSpec((1, _C_HEAD), lambda b: (0, 0)),
                    pl.BlockSpec((_C_HEAD, _GROUPS), lambda b: (0, 0)),
                    pl.BlockSpec((_GROUPS, _C_HEAD), lambda b: (0, 0)),
                ],
                out_specs=pl.BlockSpec((ohw, _C_HEAD), lambda b: (b, 0)),
            ),
            compiler_params=pltpu.CompilerParams(
                dimension_semantics=("parallel",)),
        )(y_flat, self.g1.reshape(1, -1), self.bt1.reshape(1, -1),
          self.gm, self.gmt)

    def _gn2_head(self, y2, n_real):
        """Second GroupNorm+SiLU fused with the 1280->1 head (VPU dot) and the
        scalar classifier losses. Returns (logits (B,1), loss (1,1), sig (B,1))."""
        B = y2.shape[0]
        return pl.pallas_call(
            functools.partial(_gn_silu_head_kernel, n_norm=float(_CG),
                              n_real=int(n_real)),
            out_shape=(
                jax.ShapeDtypeStruct((B, 1), jnp.float32),
                jax.ShapeDtypeStruct((1, 1), jnp.float32),
                jax.ShapeDtypeStruct((B, 1), jnp.float32),
            ),
        )(y2, self.g2.reshape(1, -1), self.bt2.reshape(1, -1),
          self.gm, self.gmt, self.w3_vec, self.b3.reshape(1, 1))

    def _cls_pred_branch(self, rep, n_real):
        """rep: (B, 1280, H, W) NCHW -> (logits (B,1), loss (1,1), sig (B,1)).
        Internally NHWC, bf16 activations into the MXU matmuls."""
        B, _, H, W = rep.shape
        assert (H, W) == (8, 8), "cls head expects an 8x8 mid-block rep"
        # bf16 before im2col: the materialised patch matrix is half the bytes.
        x = jnp.transpose(rep, (0, 2, 3, 1)).astype(jnp.bfloat16)   # (B,8,8,1280)
        cols, oh, ow = im2col_nhwc(x, k=4, s=2, p=1)                # (B*16, 20480) bf16
        y = matmul_bias(cols, self.w1_q, self.w1_scale, self.b1)    # (B*16, 1280) f32
        y = self._gn1_silu(y, B, oh * ow)                           # (B*16, 1280) bf16
        # conv2 (k4, s4, p0) on a 4x4 map == one patch per image: its im2col is
        # a plain row-major reshape of the NHWC activation.
        cols2 = y.reshape(B, oh * ow * _C_HEAD)                     # (B, 20480) bf16
        y2 = matmul_bias(cols2, self.w2_q, self.w2_scale, self.b2)  # (B, 1280) f32
        return self._gn2_head(y2, n_real)

    def _compute_cls_outputs(self, image, text_embedding, key=None,
                             unet_added_conditions=None, n_real=0):
        B = image.shape[0]
        if self.diffusion_gan:
            kt, kn = jax.random.split(key)
            timesteps = jax.random.randint(kt, (B,), 0,
                                           self.diffusion_gan_max_timestep)
            image = self._add_noise(
                image, jax.random.normal(kn, image.shape, jnp.float32),
                timesteps)
        else:
            timesteps = jnp.zeros((B,), jnp.int32)
        rep = self._fake_unet_classify(image, timesteps, text_embedding)
        return self._cls_pred_branch(rep.astype(jnp.float32), n_real)

    def compute_cls_logits(self, image, text_embedding, key=None,
                           unet_added_conditions=None):
        logits, _, _ = self._compute_cls_outputs(
            image, text_embedding, key=key,
            unet_added_conditions=unet_added_conditions, n_real=0)
        return logits

    # ------------------------- losses -------------------------

    def compute_distribution_matching_loss(self, latents, text_embedding,
                                           uncond_embedding, key):
        B = latents.shape[0]
        kt, kn = jax.random.split(key)
        timesteps = jax.random.randint(
            kt, (B,), self.min_step,
            min(self.max_step + 1, self.num_train_timesteps))
        noise = jax.random.normal(kn, latents.shape, jnp.float32)
        noisy = self._add_noise(latents, noise, timesteps)

        # fake branch: guidance scale asserted == 1 -> direct prediction.
        fake_eps = self._fake_unet(noisy, timesteps, text_embedding)
        # real branch: CFG halves are combined inside the fused DM kernel.
        real_u, real_t, cfg = self._predict_noise_parts(
            self._real_unet, noisy, text_embedding, uncond_embedding,
            timesteps, self.real_guidance_scale)

        a, s = self._acp_factors(timesteps, B)
        lf = latents.reshape(B, -1)
        xr, xf, grad, loss, gnorm = pl.pallas_call(
            functools.partial(_dm_fused_kernel, cfg_scale=cfg),
            out_shape=(
                jax.ShapeDtypeStruct(lf.shape, jnp.float32),
                jax.ShapeDtypeStruct(lf.shape, jnp.float32),
                jax.ShapeDtypeStruct(lf.shape, jnp.float32),
                jax.ShapeDtypeStruct((1, 1), jnp.float32),
                jax.ShapeDtypeStruct((1, 1), jnp.float32),
            ),
        )(lf, noisy.reshape(B, -1), fake_eps.reshape(B, -1),
          real_u.reshape(B, -1), real_t.reshape(B, -1), a, s)

        loss_dict = {"loss_dm": loss[0, 0]}
        dm_log_dict = {
            "dmtrain_noisy_latents": noisy,
            "dmtrain_pred_real_image": xr.reshape(latents.shape),
            "dmtrain_pred_fake_image": xf.reshape(latents.shape),
            "dmtrain_grad": grad.reshape(latents.shape),
            "dmtrain_gradient_norm": gnorm[0, 0],
        }
        return loss_dict, dm_log_dict

    def compute_loss_fake(self, latents, text_embedding, uncond_embedding, key):
        B = latents.shape[0]
        latents = jax.lax.stop_gradient(latents)
        kt, kn = jax.random.split(key)
        noise = jax.random.normal(kn, latents.shape, jnp.float32)
        timesteps = jax.random.randint(kt, (B,), 0, self.num_train_timesteps)
        noisy = self._add_noise(latents, noise, timesteps)
        # guidance scale 1 -> direct prediction (no CFG concat needed).
        fake_noise_pred, _, _ = self._predict_noise_parts(
            self._fake_unet, noisy, text_embedding, uncond_embedding,
            timesteps, guidance_scale=1)
        a, s = self._acp_factors(timesteps, B)
        x0, loss_fake = pl.pallas_call(
            _fake_loss_kernel,
            out_shape=(
                jax.ShapeDtypeStruct((B, latents.size // B), jnp.float32),
                jax.ShapeDtypeStruct((1, 1), jnp.float32),
            ),
        )(noisy.reshape(B, -1), fake_noise_pred.reshape(B, -1),
          noise.reshape(B, -1), a, s)
        loss_dict = {"loss_fake_mean": loss_fake[0, 0]}
        fake_log_dict = {
            "faketrain_latents": latents,
            "faketrain_noisy_latents": noisy,
            "faketrain_x0_pred": x0.reshape(latents.shape),
        }
        return loss_dict, fake_log_dict

    def compute_generator_clean_cls_loss(self, fake_image, text_embedding,
                                         key=None, unet_added_conditions=None):
        # softplus(-logits).mean() is computed inside the fused GN2 head kernel.
        _, gen_cls_loss, _ = self._compute_cls_outputs(
            fake_image, text_embedding, key=key,
            unet_added_conditions=unet_added_conditions, n_real=0)
        return {"gen_cls_loss": gen_cls_loss[0, 0]}

    def compute_guidance_clean_cls_loss(self, real_image, fake_image,
                                        real_text_embedding, fake_text_embedding,
                                        key):
        # Batch real+fake through a single classifier pass so the large conv
        # weights are streamed from HBM once instead of twice; the classifier
        # loss and sigmoids come out of the fused GN2 head kernel directly.
        B = real_image.shape[0]
        images = jnp.concatenate([jax.lax.stop_gradient(real_image),
                                  jax.lax.stop_gradient(fake_image)], axis=0)
        embeddings = jnp.concatenate([real_text_embedding,
                                      fake_text_embedding], axis=0)
        _, loss, sig = self._compute_cls_outputs(images, embeddings, key=key,
                                                 n_real=B)
        log_dict = {"pred_realism_on_real": sig[:B, 0],
                    "pred_realism_on_fake": sig[B:, 0]}
        return {"guidance_cls_loss": loss[0, 0]}, log_dict

    # ------------------------- turn dispatch -------------------------

    def generator_forward(self, image, text_embedding, uncond_embedding, key):
        loss_dict, log_dict = {}, {}
        k1, k2 = jax.random.split(key)
        if not self.args.gan_alone:
            dm_dict, dm_log = self.compute_distribution_matching_loss(
                image, text_embedding, uncond_embedding, k1)
            loss_dict.update(dm_dict)
            log_dict.update(dm_log)
        if self.args.cls_on_clean_image:
            loss_dict.update(
                self.compute_generator_clean_cls_loss(image, text_embedding,
                                                      key=k2))
        return loss_dict, log_dict

    def guidance_forward(self, image, text_embedding, uncond_embedding, key,
                         real_train_dict=None):
        k1, k2 = jax.random.split(key)
        loss_dict, log_dict = self.compute_loss_fake(image, text_embedding,
                                                     uncond_embedding, k1)
        if self.args.cls_on_clean_image:
            cls_loss, cls_log = self.compute_guidance_clean_cls_loss(
                real_image=real_train_dict["gt_latent"], fake_image=image,
                real_text_embedding=text_embedding,
                fake_text_embedding=text_embedding, key=k2)
            loss_dict.update(cls_loss)
            log_dict.update(cls_log)
        return loss_dict, log_dict

    def forward(self, generator_turn=False, guidance_turn=False,
                generator_data_dict=None, guidance_data_dict=None):
        if generator_turn:
            return self.generator_forward(
                image=generator_data_dict["image"],
                text_embedding=generator_data_dict["text_embedding"],
                uncond_embedding=generator_data_dict["uncond_embedding"],
                key=generator_data_dict["rng"])
        elif guidance_turn:
            return self.guidance_forward(
                image=guidance_data_dict["image"],
                text_embedding=guidance_data_dict["text_embedding"],
                uncond_embedding=guidance_data_dict["uncond_embedding"],
                key=guidance_data_dict["rng"],
                real_train_dict=guidance_data_dict["real_train_dict"])
        raise NotImplementedError


if __name__ == "__main__":
    args = SimpleNamespace(
        num_train_timesteps=1000, min_step_percent=0.02, max_step_percent=0.98,
        real_guidance_scale=3.0, fake_guidance_scale=1.0,
        use_fp16=False, gradient_checkpointing=False,
        diffusion_gan=False, diffusion_gan_max_timestep=1000,
        gan_alone=False, cls_on_clean_image=True,
        lora_rank=8, lora_alpha=8, lora_dropout=0.0, model_id="stub",
    )

    root = jax.random.PRNGKey(0)
    kp, ki, kt, ku, kg, kr1, kr2 = jax.random.split(root, 7)
    model = SDGuidance(args, kp)

    # Latents are 256-channel (conv_in/out repeated x64 in the reference); the
    # classifier rep must be spatially 8x8 so the head reduces to 1x1.
    B, C, H, W = 2, 256, 8, 8
    image = jax.random.normal(ki, (B, C, H, W), jnp.float32)
    text_embedding = jax.random.normal(kt, (B, 8, 32), jnp.float32)
    uncond_embedding = jax.random.normal(ku, (B, 8, 32), jnp.float32)
    gt_latent = jax.random.normal(kg, (B, C, H, W), jnp.float32)

    gen_loss, gen_log = model.forward(
        generator_turn=True,
        generator_data_dict={"image": image, "text_embedding": text_embedding,
                             "uncond_embedding": uncond_embedding, "rng": kr1})
    guid_loss, guid_log = model.forward(
        guidance_turn=True,
        guidance_data_dict={"image": image, "text_embedding": text_embedding,
                            "uncond_embedding": uncond_embedding,
                            "real_train_dict": {"gt_latent": gt_latent},
                            "rng": kr2})

    jax.block_until_ready((gen_loss, gen_log, guid_loss, guid_log))
    print("KERNEL_OK")
</pallas_src>

<mosaic_0001>
module attributes {stable_mosaic.version = 11 : i64} {
  func.func @_add_noise_kernel(%arg0: memref<2x16384xf32, #tpu.memory_space<vmem>>, %arg1: memref<2x16384xf32, #tpu.memory_space<vmem>>, %arg2: memref<2x1xf32, #tpu.memory_space<vmem>>, %arg3: memref<2x1xf32, #tpu.memory_space<vmem>>, %arg4: memref<2x16384xf32, #tpu.memory_space<vmem>>) attributes {dimension_semantics = [], scalar_prefetch = 0 : i64, scratch_operands = 0 : i64, tpu.core_type = #tpu.core_type<tc>} {
    %c0 = arith.constant 0 : index
    %c0_0 = arith.constant 0 : index
    %0 = vector.load %arg2[%c0, %c0_0] : memref<2x1xf32, #tpu.memory_space<vmem>>, vector<2x1xf32>
    %c0_1 = arith.constant 0 : index
    %c0_2 = arith.constant 0 : index
    %1 = vector.load %arg0[%c0_1, %c0_2] : memref<2x16384xf32, #tpu.memory_space<vmem>>, vector<2x16384xf32>
    %2 = vector.broadcast %0 : vector<2x1xf32> to vector<2x16384xf32>
    %3 = arith.mulf %2, %1 : vector<2x16384xf32>
    %c0_3 = arith.constant 0 : index
    %c0_4 = arith.constant 0 : index
    %4 = vector.load %arg3[%c0_3, %c0_4] : memref<2x1xf32, #tpu.memory_space<vmem>>, vector<2x1xf32>
    %c0_5 = arith.constant 0 : index
    %c0_6 = arith.constant 0 : index
    %5 = vector.load %arg1[%c0_5, %c0_6] : memref<2x16384xf32, #tpu.memory_space<vmem>>, vector<2x16384xf32>
    %6 = vector.broadcast %4 : vector<2x1xf32> to vector<2x16384xf32>
    %7 = arith.mulf %6, %5 : vector<2x16384xf32>
    %8 = arith.addf %3, %7 : vector<2x16384xf32>
    %c0_7 = arith.constant 0 : index
    %c0_8 = arith.constant 0 : index
    %9 = vector.load %arg4[%c0_7, %c0_8] : memref<2x16384xf32, #tpu.memory_space<vmem>>, vector<2x16384xf32>
    tpu.vector_store %arg4[%c0_7, %c0_8], %8 {strides = array<i32>} : memref<2x16384xf32, #tpu.memory_space<vmem>>, vector<2x16384xf32>,
    return
  }
}

</mosaic_0001>

<bundles_post_ra>
// kernel: tpu_custom_call.1
= control target key start
LH: loop header
LB: loop body
LE: loop exit
PB: predicated region body
PF: predicated region fallthrough
CT: control target
= control target key end

     0   :  { %9 = vsyncpa [#allocation3], 0  ;;  %s5506_s0 = inlined_call_operand.hbm [shape: f32[2,16384], index: 0, kind: input, shape index: {}]   ;;  %s5507_s1 = inlined_call_operand.hbm [shape: f32[2,16384], index: 1, kind: input, shape index: {}]   ;;  %s5508_s2 = inlined_call_operand.vmem [shape: f32[2,1], index: 2, kind: input, shape index: {}]   ;;  %s5509_s3 = inlined_call_operand.vmem [shape: f32[2,1], index: 3, kind: input, shape index: {}]   ;;  %s5510_s4 = inlined_call_operand.hbm [shape: f32[2,16384], index: 4, kind: output, shape index: {}]  }
   0x1   :  { %10 = vsyncpa [#allocation6], 0 }
   0x2   :  { %11 = vsyncpa [#allocation4], 0  ;;  %s2804_s15 = smov [#allocation2]   ;;  %s2805_s17 = smov [#allocation5]  }
   0x3   :  { %s18_s16 = sshll.u32 %s2804_s15, 4  ;;  %s28_s18 = sshll.u32 %s2805_s17, 4  ;;  %s19_s16 = int_to_ptr.vmem [resolvable:$true] %s18_s16  ;;  %s29_s18 = int_to_ptr.vmem [resolvable:$true] %s28_s18 }
   0x4   :  { %s2732_s21 = scalar_lea.hbm %s5506_s0, 4096 }
   0x5   :  { %p2733_p0 = scmp.ne.s32.totalorder %s5506_s0, %s2732_s21  ;;  %p2736_p1 = scmp.lt.u32.totalorder %s2732_s21, %s5506_s0 }
   0x7   :  { %p2738_p2 = pnand %p2736_p1, %p2733_p0 }
   0x9   :  { %2741 = shalt.err (!%p2738_p2)
}
   0xa   :  { %s2742_s26 = scalar_lea.vmem %s19_s16, 4096  ;;  %p2747_p4 = scmp.lt.s32.totalorder %s19_s16, %s19_s16 }
   0xb   :  { %p2743_p3 = scmp.ne.s32.totalorder %s19_s16, %s2742_s26  ;;  %p2748_p5 = scmp.lt.s32.totalorder %s2742_s26, %s2742_s26 }
   0xd   :  { %p2749_p6 = por %p2748_p5, %p2747_p4 }
   0xf   :  { %p2750_p7 = pnand %p2749_p6, %p2743_p3 }
  0x11   :  { %2753 = shalt.err (!%p2750_p7)
}
  0x12   :  { %21 = dma.hbm_to_vmem [thread:$0]  %s5506_s0, 4096, %s19_s16, [#allocation3]  }
  0x13   :  { %s2754_s5 = scalar_lea.hbm %s5507_s1, 4096 }
  0x14   :  { %p2755_p8 = scmp.ne.s32.totalorder %s5507_s1, %s2754_s5  ;;  %p2758_p9 = scmp.lt.u32.totalorder %s2754_s5, %s5507_s1 }
  0x16   :  { %p2760_p10 = pnand %p2758_p9, %p2755_p8 }
  0x18   :  { %2763 = shalt.err (!%p2760_p10)
}
  0x19   :  { %s2764_s10 = scalar_lea.vmem %s29_s18, 4096  ;;  %p2769_p12 = scmp.lt.s32.totalorder %s29_s18, %s29_s18 }
  0x1a   :  { %p2765_p11 = scmp.ne.s32.totalorder %s29_s18, %s2764_s10  ;;  %p2770_p13 = scmp.lt.s32.totalorder %s2764_s10, %s2764_s10 }
  0x1c   :  { %p2771_p0 = por %p2770_p13, %p2769_p12 }
  0x1e   :  { %p2772_p1 = pnand %p2771_p0, %p2765_p11 }
  0x20   :  { %2775 = shalt.err (!%p2772_p1)
}
  0x21   :  { %31 = dma.hbm_to_vmem [thread:$0]  %s5507_s1, 4096, %s29_s18, [#allocation6]  }
  0x22   :  { %2798 = dma.done.wait [#allocation3], 4096  }
  0x23   :  { %2799 = vsyncadd [#allocation3], 4294963200 }
  0x24   :  { %2800 = dma.done.wait [#allocation6], 4096  }
  0x25   :  { %2801 = vsyncadd [#allocation6], 4294963200  ;;  %v2806_v0 = vmov 0   ;;  %v42_v1 = vld [vmem:[%s5508_s2] sm:$0x3]  ;;  %v116_v5 = vlaneseq  ;;  %v44_v9 = vld [vmem:[#allocation2 + $0x8] sm:$0xff] }
  0x26   :  { %2667 = vset.pattern.permute.xlu0 %v2806_v0  ;;  %v912_v2 = vld [vmem:[%s5509_s3] sm:$0x3]  ;;  %v2807_v3 = vmov 1983009808   ;;  %v45_v10 = vld [vmem:[#allocation2 + $0x10] sm:$0xff]  ;;  %v46_v12 = vld [vmem:[#allocation2 + $0x18] sm:$0xff]  ;;  %v129_v15 = vcombine.high %v44_v9, %v44_v9 }
  0x27   :  { %77 = vperm.xlu0 %2667, %v42_v1   ;;  %v114_v4 = vunpack.c.l.s4 %v2807_v3  ;;  %v117_v7 = vshrl.u32 %v116_v5, 7  ;;  %v43_v8 = vld [vmem:[#allocation2] sm:$0xff]  ;;  %v146_v16 = vcombine.high %v45_v10, %v45_v10  ;;  %v48_v17 = vld [vmem:[#allocation2 + $0x28] sm:$0xff]  ;;  %v163_v19 = vcombine.high %v46_v12, %v46_v12  ;;  %v49_v20 = vld [vmem:[#allocation2 + $0x30] sm:$0xff]  ;;  %s2808_s1 = smov [#allocation7]  }
  0x28   :  { %v112_v13 = vcombine.high %v43_v8, %v43_v8  ;;  %v47_v14 = vld [vmem:[#allocation2 + $0x20] sm:$0xff]  ;;  %v50_v23 = vld [vmem:[#allocation2 + $0x38] sm:$0xff]  ;;  %v197_v29 = vcombine.high %v48_v17, %v48_v17  ;;  %v214_v33 = vcombine.high %v49_v20, %v49_v20  ;;  %v52_v34 = vld [vmem:[#allocation2 + $0x48] sm:$0xff]  ;;  %s2652_s2 = sshll.u32 %s2808_s1, 4  ;;  %s2653_s2 = int_to_ptr.vmem [resolvable:$true] %s2652_s2 }
  0x29   :  { %v115_v6 = vunpack.c.0.s8 %v114_v4  ;;  %v180_v26 = vcombine.high %v47_v14, %v47_v14  ;;  %v51_v30 = vld [vmem:[#allocation2 + $0x40] sm:$0xff]  ;;  %v231_v38 = vcombine.high %v50_v23, %v50_v23  ;;  %v53_v39 = vld [vmem:[#allocation2 + $0x50] sm:$0xff]  ;;  %v54_v44 = vld [vmem:[#allocation2 + $0x58] sm:$0xff]  ;;  %v265_v53 = vcombine.high %v52_v34, %v52_v34  ;;  %s2776_s3 = scalar_lea.vmem %s2653_s2, 4096  ;;  %p2781_p3 = scmp.lt.s32.totalorder %s2653_s2, %s2653_s2 }
  0x2a   :  { %v248_v48 = vcombine.high %v51_v30, %v51_v30  ;;  %v55_v49 = vld [vmem:[#allocation2 + $0x60] sm:$0xff]  ;;  %v282_v57 = vcombine.high %v53_v39, %v53_v39  ;;  %v56_v58 = vld [vmem:[#allocation2 + $0x68] sm:$0xff]  ;;  %v299_v62 = vcombine.high %v54_v44, %v54_v44  ;;  %v57_v63 = vld [vmem:[#allocation2 + $0x70] sm:$0xff]  ;;  %p2777_p2 = scmp.ne.s32.totalorder %s2653_s2, %s2776_s3  ;;  %p2782_p4 = scmp.lt.s32.totalorder %s2776_s3, %s2776_s3 }
  0x2b   :  { %947 = vperm.xlu0 %2667, %v912_v2   ;;  %v2864_v11 = vsub.s32 %v115_v6, %v117_v7  ;;  %v316_v3 = vcombine.high %v55_v49, %v55_v49  ;;  %v67_v60 = vld [vmem:[#allocation2 + $0xc0] sm:$0xff]  ;;  %v68_v54 = vld [vmem:[#allocation2 + $0xc8] sm:$0xff]  ;;  %v69_v41 = vld [vmem:[#allocation2 + $0xd0] sm:$0xff] }
  0x2c   :  { %v71_v45 = vld [vmem:[#allocation2 + $0xe0] sm:$0xff]  ;;  %v537_v35 = vcombine.high %v68_v54, %v68_v54  ;;  %v554_v40 = vcombine.high %v69_v41, %v69_v41  ;;  %v72_v31 = vld [vmem:[#allocation2 + $0xe8] sm:$0xff]  ;;  %p2783_p5 = por %p2782_p4, %p2781_p3 }
  0x2d   :  { %5657 = vst [vmem:[#allocation11_spill] sm:$0xff] %v2864_v11  ;;  %v2867_v18 = vrot.slane %v43_v8, %v2864_v11  ;;  %v2870_v21 = vrot.slane %v44_v9, %v2864_v11  ;;  %v2873_v22 = vrot.slane %v45_v10, %v2864_v11  ;;  %v2876_v24 = vrot.slane %v112_v13, %v2864_v11  ;;  %v58_v8 = vld [vmem:[#allocation2 + $0x78] sm:$0xff]  ;;  %v65_v9 = vld [vmem:[#allocation2 + $0xb0] sm:$0xff] }
  0x2e   :  { %v2879_v25 = vrot.slane %v46_v12, %v2864_v11  ;;  %v2882_v27 = vrot.slane %v129_v15, %v2864_v11  ;;  %v2885_v28 = vrot.slane %v146_v16, %v2864_v11  ;;  %v2890_v32 = vrot.slane %v163_v19, %v2864_v11  ;;  %v64_v15 = vld [vmem:[#allocation2 + $0xa8] sm:$0xff]  ;;  %p2784_p6 = pnand %p2783_p5, %p2777_p2 }
  0x2f   :  { %v2897_v37 = vrot.slane %v47_v14, %v2864_v11  ;;  %v2904_v42 = vrot.slane %v180_v26, %v2864_v11  ;;  %v2907_v43 = vrot.slane %v48_v17, %v2864_v11  ;;  %v2914_v47 = vrot.slane %v197_v29, %v2864_v11  ;;  %v59_v14 = vld [vmem:[#allocation2 + $0x80] sm:$0xff] }
  0x30   :  { %v2919_v51 = vrot.slane %v49_v20, %v2864_v11  ;;  %v2922_v52 = vrot.slane %v214_v33, %v2864_v11  ;;  %v2927_v55 = vrot.slane %v50_v23, %v2864_v11  ;;  %v2930_v56 = vrot.slane %v231_v38, %v2864_v11  ;;  %v60_v20 = vld [vmem:[#allocation2 + $0x88] sm:$0xff]  ;;  %v61_v33 = vld [vmem:[#allocation2 + $0x90] sm:$0xff]  ;;  %v63_v26 = vld [vmem:[#allocation2 + $0xa0] sm:$0xff] }
  0x31   :  { %v2937_v61 = vrot.slane %v51_v30, %v2864_v11  ;;  %v2942_v1 = vrot.slane %v248_v48, %v2864_v11  ;;  %v2945_v2 = vrot.slane %v52_v34, %v2864_v11  ;;  %v2952_v6 = vrot.slane %v265_v53, %v2864_v11  ;;  %v62_v48 = vld [vmem:[#allocation2 + $0x98] sm:$0xff] }
  0x32   :  { %v2955_v7 = vrot.slane %v53_v39, %v2864_v11  ;;  %v2962_v12 = vrot.slane %v282_v57, %v2864_v11  ;;  %v333_v13 = vcombine.high %v56_v58, %v56_v58  ;;  %v2967_v16 = vrot.slane %v54_v44, %v2864_v11 }
  0x33   :  { %v2970_v17 = vrot.slane %v299_v62, %v2864_v11  ;;  %v350_v19 = vcombine.high %v57_v63, %v57_v63  ;;  %v2977_v29 = vrot.slane %v55_v49, %v2864_v11  ;;  %v2980_v30 = vrot.slane %v316_v3, %v2864_v11  ;;  %v66_v3 = vld [vmem:[#allocation2 + $0xb8] sm:$0xff] }
  0x34   :  { %v2987_v39 = vrot.slane %v56_v58, %v2864_v11  ;;  %v367_v44 = vcombine.high %v58_v8, %v58_v8  ;;  %v2992_v49 = vrot.slane %v333_v13, %v2864_v11  ;;  %v2995_v57 = vrot.slane %v57_v63, %v2864_v11 }
  0x35   :  { %v384_v62 = vcombine.high %v59_v14, %v59_v14  ;;  %v3002_v58 = vrot.slane %v350_v19, %v2864_v11  ;;  %v401_v34 = vcombine.high %v60_v20, %v60_v20  ;;  %v3009_v63 = vrot.slane %v58_v8, %v2864_v11 }
  0x36   :  { %v418_v23 = vcombine.high %v61_v33, %v61_v33  ;;  %v3014_v38 = vrot.slane %v367_v44, %v2864_v11  ;;  %v3017_v19 = vrot.slane %v59_v14, %v2864_v11  ;;  %v435_v10 = vcombine.high %v62_v48, %v62_v48 }
  0x37   :  { %v3024_v13 = vrot.slane %v384_v62, %v2864_v11  ;;  %v3027_v5 = vrot.slane %v60_v20, %v2864_v11  ;;  %v3032_v14 = vrot.slane %v401_v34, %v2864_v11  ;;  %v3035_v4 = vrot.slane %v61_v33, %v2864_v11 }
  0x38   :  { %v452_v53 = vcombine.high %v63_v26, %v63_v26  ;;  %v3040_v62 = vrot.slane %v418_v23, %v2864_v11  ;;  %v3043_v20 = vrot.slane %v62_v48, %v2864_v11  ;;  %v469_v0 = vcombine.high %v64_v15, %v64_v15  ;;  %v70_v23 = vld [vmem:[#allocation2 + $0xd8] sm:$0xff] }
  0x39   :  { %v3050_v33 = vrot.slane %v435_v10, %v2864_v11  ;;  %v486_v59 = vcombine.high %v65_v9, %v65_v9  ;;  %v3057_v8 = vrot.slane %v63_v26, %v2864_v11  ;;  %v503_v50 = vcombine.high %v66_v3, %v66_v3 }
  0x3a   :  { %5658 = vst [vmem:[#allocation12_spill] sm:$0xff] %v3040_v62  ;;  %5659 = vst [vmem:[#allocation13_spill] sm:$0xff] %v3043_v20  ;;  %v3064_v34 = vrot.slane %v452_v53, %v2864_v11  ;;  %v3067_v46 = vrot.slane %v64_v15, %v2864_v11  ;;  %v3074_v36 = vrot.slane %v469_v0, %v2864_v11  ;;  %v73_v20 = vld [vmem:[#allocation2 + $0xf0] sm:$0xff]  ;;  %v934_v62 = vld [vmem:[#allocation5 + $0xa8] sm:$0xff] }
  0x3b   :  { %5660 = vst [vmem:[#allocation14_spill] sm:$0xff] %v3050_v33  ;;  %5661 = vst [vmem:[#allocation15_spill] sm:$0xff] %v3057_v8  ;;  %v520_v44 = vcombine.high %v67_v60, %v67_v60  ;;  %v3079_v53 = vrot.slane %v65_v9, %v2864_v11  ;;  %v3082_v15 = vrot.slane %v486_v59, %v2864_v11  ;;  %v914_v9 = vld [vmem:[#allocation5 + $0x8] sm:$0xff] }
  0x3c   :  { %5662 = vst [vmem:[#allocation16_spill] sm:$0xff] %v3064_v34  ;;  %5663 = vst [vmem:[#allocation17_spill] sm:$0xff] %v3067_v46  ;;  %v3087_v26 = vrot.slane %v66_v3, %v2864_v11  ;;  %v3090_v0 = vrot.slane %v503_v50, %v2864_v11  ;;  %v3097_v59 = vrot.slane %v67_v60, %v2864_v11  ;;  %v74_v3 = vld [vmem:[#allocation2 + $0xf8] sm:$0xff]  ;;  %v922_v34 = vld [vmem:[#allocation5 + $0x48] sm:$0xff] }
  0x3d   :  { %5664 = vst [vmem:[#allocation18_spill] sm:$0xff] %v3074_v36  ;;  %5665 = vst [vmem:[#allocation19_spill] sm:$0xff] %v3079_v53  ;;  %v571_v33 = vcombine.high %v70_v23, %v70_v23  ;;  %v3102_v48 = vrot.slane %v520_v44, %v2864_v11  ;;  %v3105_v50 = vrot.slane %v68_v54, %v2864_v11  ;;  %v913_v53 = vld [vmem:[#allocation5] sm:$0xff] }
  0x3e   :  { %5666 = vst [vmem:[#allocation20_spill] sm:$0xff] %v3082_v15  ;;  %5667 = vst [vmem:[#allocation21_spill] sm:$0xff] %v3087_v26  ;;  %v588_v8 = vcombine.high %v71_v45, %v71_v45  ;;  %v3112_v60 = vrot.slane %v537_v35, %v2864_v11  ;;  %v3115_v46 = vrot.slane %v69_v41, %v2864_v11 }
  0x3f   :  { %5668 = vst [vmem:[#allocation22_spill] sm:$0xff] %v3090_v0  ;;  %5669 = vst [vmem:[#allocation23_spill] sm:$0xff] %v3097_v59  ;;  %v3122_v36 = vrot.slane %v554_v40, %v2864_v11  ;;  %v605_v10 = vcombine.high %v72_v31, %v72_v31  ;;  %v3127_v35 = vrot.slane %v70_v23, %v2864_v11 }
  0x40   :  { %5670 = vst [vmem:[#allocation24_spill] sm:$0xff] %v3102_v48  ;;  %5671 = vst [vmem:[#allocation25_spill] sm:$0xff] %v3105_v50  ;;  %v3130_v41 = vrot.slane %v571_v33, %v2864_v11  ;;  %v622_v15 = vcombine.high %v73_v20, %v73_v20  ;;  %v3137_v40 = vrot.slane %v71_v45, %v2864_v11  ;;  %v915_v48 = vld [vmem:[#allocation5 + $0x10] sm:$0xff]  ;;  %v916_v50 = vld [vmem:[#allocation5 + $0x18] sm:$0xff] }
  0x41   :  { %5672 = vst [vmem:[#allocation26_spill] sm:$0xff] %v3112_v60  ;;  %5673 = vst [vmem:[#allocation27_spill] sm:$0xff] %v3115_v46  ;;  %v3140_v0 = vrot.slane %v588_v8, %v2864_v11  ;;  %v3147_v59 = vrot.slane %v72_v31, %v2864_v11  ;;  %v639_v44 = vcombine.high %v74_v3, %v74_v3 }
  0x42   :  { %5674 = vst [vmem:[#allocation28_spill] sm:$0xff] %v3122_v36  ;;  %5675 = vst [vmem:[#allocation29_spill] sm:$0xff] %v3127_v35  ;;  %v3152_v45 = vrot.slane %v605_v10, %v2864_v11  ;;  %v3155_v8 = vrot.slane %v73_v20, %v2864_v11  ;;  %v982_v26 = vcombine.high %v913_v53, %v913_v53  ;;  %v917_v36 = vld [vmem:[#allocation5 + $0x20] sm:$0xff]  ;;  %v919_v10 = vld [vmem:[#allocation5 + $0x30] sm:$0xff] }
  0x43   :  { %5676 = vst [vmem:[#allocation30_spill] sm:$0xff] %v3130_v41  ;;  %5677 = vst [vmem:[#allocation31_spill] sm:$0xff] %v3137_v40  ;;  %v3162_v33 = vrot.slane %v622_v15, %v2864_v11  ;;  %v999_v46 = vcombine.high %v914_v9, %v914_v9  ;;  %v3169_v20 = vrot.slane %v74_v3, %v2864_v11  ;;  %v918_v15 = vld [vmem:[#allocation5 + $0x28] sm:$0xff] }
  0x44   :  { %5678 = vst [vmem:[#allocation32_spill] sm:$0xff] %v3140_v0  ;;  %5679 = vst [vmem:[#allocation33_spill] sm:$0xff] %v3147_v59  ;;  %v1016_v60 = vcombine.high %v915_v48, %v915_v48  ;;  %v3174_v31 = vrot.slane %v639_v44, %v2864_v11  ;;  %v3177_v41 = vrot.slane %v913_v53, %v2864_v11  ;;  %v920_v59 = vld [vmem:[#allocation5 + $0x38] sm:$0xff]  ;;  %v923_v44 = vld [vmem:[#allocation5 + $0x50] sm:$0xff] }
  0x45   :  { %5680 = vst [vmem:[#allocation34_spill] sm:$0xff] %v3152_v45  ;;  %5681 = vst [vmem:[#allocation35_spill] sm:$0xff] %v3155_v8  ;;  %v1033_v35 = vcombine.high %v916_v50, %v916_v50  ;;  %v3184_v0 = vrot.slane %v982_v26, %v2864_v11  ;;  %v3187_v23 = vrot.slane %v914_v9, %v2864_v11 }
  0x46   :  { %5682 = vst [vmem:[#allocation36_spill] sm:$0xff] %v3162_v33  ;;  %5683 = vst [vmem:[#allocation37_spill] sm:$0xff] %v3169_v20  ;;  %v3192_v53 = vrot.slane %v999_v46, %v2864_v11  ;;  %v3195_v40 = vrot.slane %v915_v48, %v2864_v11  ;;  %v1050_v54 = vcombine.high %v917_v36, %v917_v36  ;;  %v921_v33 = vld [vmem:[#allocation5 + $0x40] sm:$0xff] }
  0x47   :  { %5684 = vst [vmem:[#allocation38_spill] sm:$0xff] %v3174_v31  ;;  %5685 = vst [vmem:[#allocation39_spill] sm:$0xff] %v3177_v41  ;;  %v3200_v26 = vrot.slane %v1016_v60, %v2864_v11  ;;  %v3203_v9 = vrot.slane %v916_v50, %v2864_v11  ;;  %v1067_v8 = vcombine.high %v918_v15, %v918_v15  ;;  %v924_v60 = vld [vmem:[#allocation5 + $0x58] sm:$0xff] }
  0x48   :  { %5686 = vst [vmem:[#allocation40_spill] sm:$0xff] %v3184_v0  ;;  %5687 = vst [vmem:[#allocation41_spill] sm:$0xff] %v3187_v23  ;;  %v3210_v48 = vrot.slane %v1033_v35, %v2864_v11  ;;  %v1084_v45 = vcombine.high %v919_v10, %v919_v10  ;;  %v3217_v3 = vrot.slane %v917_v36, %v2864_v11  ;;  %v926_v0 = vld [vmem:[#allocation5 + $0x68] sm:$0xff]  ;;  %v929_v35 = vld [vmem:[#allocation5 + $0x80] sm:$0xff] }
  0x49   :  { %5688 = vst [vmem:[#allocation42_spill] sm:$0xff] %v3192_v53  ;;  %5689 = vst [vmem:[#allocation43_spill] sm:$0xff] %v3195_v40  ;;  %v1101_v20 = vcombine.high %v920_v59, %v920_v59  ;;  %v3224_v46 = vrot.slane %v1050_v54, %v2864_v11  ;;  %v3227_v41 = vrot.slane %v918_v15, %v2864_v11  ;;  %v925_v53 = vld [vmem:[#allocation5 + $0x60] sm:$0xff] }
  0x4a   :  { %5690 = vst [vmem:[#allocation44_spill] sm:$0xff] %v3200_v26  ;;  %5691 = vst [vmem:[#allocation45_spill] sm:$0xff] %v3203_v9  ;;  %v3234_v23 = vrot.slane %v1067_v8, %v2864_v11  ;;  %v1118_v31 = vcombine.high %v921_v33, %v921_v33  ;;  %v3239_v54 = vrot.slane %v919_v10, %v2864_v11  ;;  %v927_v26 = vld [vmem:[#allocation5 + $0x70] sm:$0xff] }
  0x4b   :  { %5692 = vst [vmem:[#allocation46_spill] sm:$0xff] %v3210_v48  ;;  %5693 = vst [vmem:[#allocation47_spill] sm:$0xff] %v3217_v3  ;;  %v3242_v15 = vrot.slane %v1084_v45, %v2864_v11  ;;  %v1135_v40 = vcombine.high %v922_v34, %v922_v34  ;;  %v3247_v36 = vrot.slane %v920_v59, %v2864_v11  ;;  %v931_v10 = vld [vmem:[#allocation5 + $0x90] sm:$0xff] }
  0x4c   :  { %5694 = vst [vmem:[#allocation48_spill] sm:$0xff] %v3224_v46  ;;  %5695 = vst [vmem:[#allocation49_spill] sm:$0xff] %v3227_v41  ;;  %v3250_v8 = vrot.slane %v1101_v20, %v2864_v11  ;;  %v1152_v9 = vcombine.high %v923_v44, %v923_v44  ;;  %v3257_v45 = vrot.slane %v921_v33, %v2864_v11  ;;  %v928_v46 = vld [vmem:[#allocation5 + $0x78] sm:$0xff] }
  0x4d   :  { %5696 = vst [vmem:[#allocation50_spill] sm:$0xff] %v3234_v23  ;;  %5697 = vst [vmem:[#allocation51_spill] sm:$0xff] %v3239_v54  ;;  %v1169_v48 = vcombine.high %v924_v60, %v924_v60  ;;  %v3262_v59 = vrot.slane %v1118_v31, %v2864_v11  ;;  %v3265_v20 = vrot.slane %v922_v34, %v2864_v11  ;;  %v933_v54 = vld [vmem:[#allocation5 + $0xa0] sm:$0xff] }
  0x4e   :  { %5698 = vst [vmem:[#allocation52_spill] sm:$0xff] %v3242_v15  ;;  %5699 = vst [vmem:[#allocation53_spill] sm:$0xff] %v3247_v36  ;;  %v1186_v3 = vcombine.high %v925_v53, %v925_v53  ;;  %v3272_v33 = vrot.slane %v1135_v40, %v2864_v11  ;;  %v1203_v41 = vcombine.high %v926_v0, %v926_v0  ;;  %v930_v36 = vld [vmem:[#allocation5 + $0x88] sm:$0xff] }
  0x4f   :  { %5700 = vst [vmem:[#allocation54_spill] sm:$0xff] %v3250_v8  ;;  %5701 = vst [vmem:[#allocation55_spill] sm:$0xff] %v3257_v45  ;;  %v3279_v34 = vrot.slane %v923_v44, %v2864_v11  ;;  %v3282_v23 = vrot.slane %v1152_v9, %v2864_v11  ;;  %v3287_v40 = vrot.slane %v924_v60, %v2864_v11 }
  0x50   :  { %5702 = vst [vmem:[#allocation56_spill] sm:$0xff] %v3262_v59  ;;  %5703 = vst [vmem:[#allocation57_spill] sm:$0xff] %v3265_v20  ;;  %v3290_v15 = vrot.slane %v1169_v48, %v2864_v11  ;;  %v1220_v50 = vcombine.high %v927_v26, %v927_v26  ;;  %v3297_v9 = vrot.slane %v925_v53, %v2864_v11  ;;  %v932_v59 = vld [vmem:[#allocation5 + $0x98] sm:$0xff] }
  0x51   :  { %5704 = vst [vmem:[#allocation58_spill] sm:$0xff] %v3272_v33  ;;  %5705 = vst [vmem:[#allocation59_spill] sm:$0xff] %v3279_v34  ;;  %v3300_v8 = vrot.slane %v1186_v3, %v2864_v11  ;;  %v3305_v48 = vrot.slane %v926_v0, %v2864_v11  ;;  %v3308_v45 = vrot.slane %v1203_v41, %v2864_v11  ;;  %v935_v34 = vld [vmem:[#allocation5 + $0xb0] sm:$0xff]  ;;  %v937_v0 = vld [vmem:[#allocation5 + $0xc0] sm:$0xff] }
  0x52   :  { %5706 = vst [vmem:[#allocation60_spill] sm:$0xff] %v3282_v23  ;;  %5707 = vst [vmem:[#allocation61_spill] sm:$0xff] %v3287_v40  ;;  %v1237_v31 = vcombine.high %v928_v46, %v928_v46  ;;  %v3315_v3 = vrot.slane %v927_v26, %v2864_v11  ;;  %v1254_v20 = vcombine.high %v929_v35, %v929_v35 }
  0x53   :  { %5708 = vst [vmem:[#allocation62_spill] sm:$0xff] %v3290_v15  ;;  %5709 = vst [vmem:[#allocation63_spill] sm:$0xff] %v3297_v9  ;;  %v3322_v60 = vrot.slane %v1220_v50, %v2864_v11  ;;  %v1271_v33 = vcombine.high %v930_v36, %v930_v36  ;;  %v3329_v53 = vrot.slane %v928_v46, %v2864_v11  ;;  %v936_v9 = vld [vmem:[#allocation5 + $0xb8] sm:$0xff] }
  0x54   :  { %5710 = vst [vmem:[#allocation64_spill] sm:$0xff] %v3300_v8  ;;  %5711 = vst [vmem:[#allocation65_spill] sm:$0xff] %v3305_v48  ;;  %v1288_v23 = vcombine.high %v931_v10, %v931_v10  ;;  %v3336_v41 = vrot.slane %v1237_v31, %v2864_v11  ;;  %v1305_v15 = vcombine.high %v932_v59, %v932_v59 }
  0x55   :  { %5712 = vst [vmem:[#allocation66_spill] sm:$0xff] %v3308_v45  ;;  %5713 = vst [vmem:[#allocation67_spill] sm:$0xff] %v3315_v3  ;;  %v3341_v26 = vrot.slane %v929_v35, %v2864_v11  ;;  %v3344_v46 = vrot.slane %v1254_v20, %v2864_v11  ;;  %v1322_v8 = vcombine.high %v933_v54, %v933_v54 }
  0x56   :  { %5714 = vst [vmem:[#allocation68_spill] sm:$0xff] %v3322_v60  ;;  %5715 = vst [vmem:[#allocation69_spill] sm:$0xff] %v3329_v53  ;;  %v3349_v50 = vrot.slane %v930_v36, %v2864_v11  ;;  %v3352_v31 = vrot.slane %v1271_v33, %v2864_v11  ;;  %v1339_v45 = vcombine.high %v934_v62, %v934_v62 }
  0x57   :  { %5716 = vst [vmem:[#allocation70_spill] sm:$0xff] %v3336_v41  ;;  %5717 = vst [vmem:[#allocation71_spill] sm:$0xff] %v3341_v26  ;;  %v3357_v35 = vrot.slane %v931_v10, %v2864_v11  ;;  %v3360_v20 = vrot.slane %v1288_v23, %v2864_v11  ;;  %v1356_v3 = vcombine.high %v935_v34, %v935_v34  ;;  %v938_v41 = vld [vmem:[#allocation5 + $0xc8] sm:$0xff]  ;;  %v939_v26 = vld [vmem:[#allocation5 + $0xd0] sm:$0xff] }
  0x58   :  { %5718 = vst [vmem:[#allocation72_spill] sm:$0xff] %v3344_v46  ;;  %5719 = vst [vmem:[#allocation73_spill] sm:$0xff] %v3349_v50  ;;  %v3365_v36 = vrot.slane %v932_v59, %v2864_v11  ;;  %v3368_v33 = vrot.slane %v1305_v15, %v2864_v11  ;;  %v3371_v60 = vrot.slane %v933_v54, %v2864_v11  ;;  %v940_v23 = vld [vmem:[#allocation5 + $0xd8] sm:$0xff]  ;;  %v941_v15 = vld [vmem:[#allocation5 + $0xe0] sm:$0xff] }
  0x59   :  { %5720 = vst [vmem:[#allocation74_spill] sm:$0xff] %v3352_v31  ;;  %5721 = vst [vmem:[#allocation75_spill] sm:$0xff] %v3357_v35  ;;  %v3378_v44 = vrot.slane %v1322_v8, %v2864_v11  ;;  %v1373_v53 = vcombine.high %v936_v9, %v936_v9  ;;  %v3385_v54 = vrot.slane %v934_v62, %v2864_v11  ;;  %v942_v62 = vld [vmem:[#allocation5 + $0xe8] sm:$0xff]  ;;  %v943_v46 = vld [vmem:[#allocation5 + $0xf0] sm:$0xff] }
  0x5a   :  { %5722 = vst [vmem:[#allocation76_spill] sm:$0xff] %v3360_v20  ;;  %5723 = vst [vmem:[#allocation77_spill] sm:$0xff] %v3365_v36  ;;  %v3388_v10 = vrot.slane %v1339_v45, %v2864_v11  ;;  %v3395_v48 = vrot.slane %v935_v34, %v2864_v11  ;;  %v3398_v59 = vrot.slane %v1356_v3, %v2864_v11  ;;  %v944_v34 = vld [vmem:[#allocation5 + $0xf8] sm:$0xff] }
  0x5b   :  { %5724 = vst [vmem:[#allocation78_spill] sm:$0xff] %v3368_v33  ;;  %5725 = vst [vmem:[#allocation79_spill] sm:$0xff] %v3371_v60  ;;  %v3407_v35 = vrot.slane %v936_v9, %v2864_v11  ;;  %v3412_v20 = vrot.slane %v1373_v53, %v2864_v11  ;;  %v1390_v50 = vcombine.high %v937_v0, %v937_v0 }
  0x5c   :  { %5726 = vst [vmem:[#allocation80_spill] sm:$0xff] %v3378_v44  ;;  %5727 = vst [vmem:[#allocation81_spill] sm:$0xff] %v3385_v54  ;;  %v1407_v40 = vcombine.high %v938_v41, %v938_v41  ;;  %v1424_v8 = vcombine.high %v939_v26, %v939_v26  ;;  %v1441_v60 = vcombine.high %v940_v23, %v940_v23 }
  0x5d   :  { %5728 = vst [vmem:[#allocation82_spill] sm:$0xff] %v3388_v10  ;;  %5729 = vst [vmem:[#allocation83_spill] sm:$0xff] %v3398_v59  ;;  %v1458_v3 = vcombine.high %v941_v15, %v941_v15  ;;  %v1475_v44 = vcombine.high %v942_v62, %v942_v62  ;;  %v3425_v36 = vrot.slane %v937_v0, %v2864_v11 }
  0x5e   :  { %v1492_v45 = vcombine.high %v943_v46, %v943_v46  ;;  %v1509_v54 = vcombine.high %v944_v34, %v944_v34  ;;  %v3430_v10 = vrot.slane %v1390_v50, %v2864_v11  ;;  %v3433_v9 = vrot.slane %v938_v41, %v2864_v11 }
  0x5f   :  { %v3436_v33 = vrot.slane %v1407_v40, %v2864_v11  ;;  %v3439_v59 = vrot.slane %v939_v26, %v2864_v11  ;;  %v3442_v0 = vrot.slane %v1424_v8, %v2864_v11  ;;  %v3445_v53 = vrot.slane %v940_v23, %v2864_v11 }
  0x60   :  { %v3448_v31 = vrot.slane %v1441_v60, %v2864_v11  ;;  %v3451_v50 = vrot.slane %v941_v15, %v2864_v11  ;;  %v3454_v41 = vrot.slane %v1458_v3, %v2864_v11  ;;  %v3457_v40 = vrot.slane %v942_v62, %v2864_v11 }
  0x61   :  { %v3460_v26 = vrot.slane %v1475_v44, %v2864_v11  ;;  %v3463_v8 = vrot.slane %v943_v46, %v2864_v11  ;;  %v3466_v23 = vrot.slane %v1492_v45, %v2864_v11  ;;  %v3469_v60 = vrot.slane %v944_v34, %v2864_v11 }
  0x62   :  { %v3472_v15 = vrot.slane %v1509_v54, %v2864_v11  ;;  %v5730_v45 = vcombine.high %v2867_v18, %v2867_v18  ;;  %v5732_v62 = vcombine.high %v2876_v24, %v2876_v24 }
  0xa6   :  { %v3498_v11 = vpop.permute.xlu0 %77 }
  0xa7   :  { %v3510_v46 = vmul.f32 %v2867_v18, %v3498_v11  ;;  %v3516_v34 = vmul.f32 %v5730_v45, %v3498_v11  ;;  %v3520_v54 = vmul.f32 %v2876_v24, %v3498_v11  ;;  %v3526_v3 = vmul.f32 %v5732_v62, %v3498_v11 }
  0xa8   :  { %v3530_v44 = vmul.f32 %v2870_v21, %v3498_v11  ;;  %v5734_v18 = vcombine.high %v2870_v21, %v2870_v21  ;;  %v5736_v24 = vcombine.high %v2882_v27, %v2882_v27  ;;  %v5738_v21 = vcombine.high %v2873_v22, %v2873_v22 }
  0xa9   :  { %5731 = vst [vmem:[#allocation84_spill] sm:$0xff] %v3516_v34  ;;  %5733 = vst [vmem:[#allocation85_spill] sm:$0xff] %v3526_v3  ;;  %v3540_v34 = vmul.f32 %v2882_v27, %v3498_v11  ;;  %v3550_v3 = vmul.f32 %v2873_v22, %v3498_v11  ;;  %v5740_v27 = vcombine.high %v2885_v28, %v2885_v28 }
  0xaa   :  { %v3536_v45 = vmul.f32 %v5734_v18, %v3498_v11  ;;  %v3546_v62 = vmul.f32 %v5736_v24, %v3498_v11  ;;  %v3556_v18 = vmul.f32 %v5738_v21, %v3498_v11  ;;  %v5742_v22 = vcombine.high %v2879_v25, %v2879_v25 }
  0xab   :  { %v3566_v24 = vmul.f32 %v5740_v27, %v3498_v11 }
  0xac   :  { %5735 = vst [vmem:[#allocation86_spill] sm:$0xff] %v3536_v45  ;;  %5737 = vst [vmem:[#allocation87_spill] sm:$0xff] %v3546_v62  ;;  %v3560_v45 = vmul.f32 %v2885_v28, %v3498_v11  ;;  %v3570_v62 = vmul.f32 %v2879_v25, %v3498_v11  ;;  %v3576_v21 = vmul.f32 %v5742_v22, %v3498_v11 }
  0xad   :  { %5739 = vst [vmem:[#allocation88_spill] sm:$0xff] %v3556_v18  ;;  %5741 = vst [vmem:[#allocation89_spill] sm:$0xff] %v3566_v24  ;;  %v3580_v18 = vmul.f32 %v2890_v32, %v3498_v11  ;;  %v5744_v28 = vcombine.high %v2890_v32, %v2890_v32  ;;  %v3590_v24 = vmul.f32 %v2897_v37, %v3498_v11 }
  0xae   :  { %5743 = vst [vmem:[#allocation90_spill] sm:$0xff] %v3576_v21  ;;  %v5746_v25 = vcombine.high %v2897_v37, %v2897_v37  ;;  %v3600_v21 = vmul.f32 %v2904_v42, %v3498_v11  ;;  %v5748_v32 = vcombine.high %v2904_v42, %v2904_v42  ;;  %v5750_v37 = vcombine.high %v2907_v43, %v2907_v43 }
  0xaf   :  { %v3586_v27 = vmul.f32 %v5744_v28, %v3498_v11  ;;  %v5752_v42 = vcombine.high %v2914_v47, %v2914_v47 }
  0xb0   :  { %v3596_v22 = vmul.f32 %v5746_v25, %v3498_v11  ;;  %v3606_v28 = vmul.f32 %v5748_v32, %v3498_v11  ;;  %v3616_v25 = vmul.f32 %v5750_v37, %v3498_v11 }
  0xb1   :  { %5745 = vst [vmem:[#allocation91_spill] sm:$0xff] %v3586_v27  ;;  %v3610_v27 = vmul.f32 %v2907_v43, %v3498_v11  ;;  %v3626_v32 = vmul.f32 %v5752_v42, %v3498_v11  ;;  %v5755_v43 = vcombine.high %v2919_v51, %v2919_v51 }
  0xb2   :  { %5747 = vst [vmem:[#allocation92_spill] sm:$0xff] %v3596_v22  ;;  %5749 = vst [vmem:[#allocation93_spill] sm:$0xff] %v3606_v28  ;;  %v3620_v22 = vmul.f32 %v2914_v47, %v3498_v11  ;;  %v3630_v28 = vmul.f32 %v2919_v51, %v3498_v11  ;;  %v5758_v47 = vcombine.high %v2922_v52, %v2922_v52 }
  0xb3   :  { %5751 = vst [vmem:[#allocation94_spill] sm:$0xff] %v3616_v25  ;;  %5753 = vst [vmem:[#allocation95_spill] sm:$0xff] %v3626_v32  ;;  %v3636_v37 = vmul.f32 %v5755_v43, %v3498_v11  ;;  %v3640_v25 = vmul.f32 %v2922_v52, %v3498_v11  ;;  %v3650_v32 = vmul.f32 %v2927_v55, %v3498_v11 }
  0xb4   :  { %5754 = vst [vmem:[#allocation96_spill] sm:$0xff] %v3630_v28  ;;  %v3646_v42 = vmul.f32 %v5758_v47, %v3498_v11  ;;  %v5761_v51 = vcombine.high %v2927_v55, %v2927_v55  ;;  %v5764_v52 = vcombine.high %v2930_v56, %v2930_v56  ;;  %v5767_v55 = vcombine.high %v2937_v61, %v2937_v61 }
  0xb5   :  { %5756 = vst [vmem:[#allocation97_spill] sm:$0xff] %v3636_v37  ;;  %5757 = vst [vmem:[#allocation98_spill] sm:$0xff] %v3640_v25  ;;  %v3660_v37 = vmul.f32 %v2930_v56, %v3498_v11  ;;  %v5770_v56 = vcombine.high %v2942_v1, %v2942_v1  ;;  %v5967_v25 = vld [vmem:[#allocation52_spill] sm:$0xff] }
  0xb6   :  { %5759 = vst [vmem:[#allocation99_spill] sm:$0xff] %v3646_v42  ;;  %5760 = vst [vmem:[#allocation100_spill] sm:$0xff] %v3650_v32  ;;  %v3656_v43 = vmul.f32 %v5761_v51, %v3498_v11  ;;  %v3666_v47 = vmul.f32 %v5764_v52, %v3498_v11  ;;  %v3670_v42 = vmul.f32 %v2937_v61, %v3498_v11 }
  0xb7   :  { %5763 = vst [vmem:[#allocation102_spill] sm:$0xff] %v3660_v37  ;;  %v3676_v51 = vmul.f32 %v5767_v55, %v3498_v11  ;;  %v3686_v52 = vmul.f32 %v5770_v56, %v3498_v11  ;;  %v5773_v61 = vcombine.high %v2945_v2, %v2945_v2  ;;  %v5963_v37 = vld [vmem:[#allocation51_spill] sm:$0xff] }
  0xb8   :  { %5762 = vst [vmem:[#allocation101_spill] sm:$0xff] %v3656_v43  ;;  %5765 = vst [vmem:[#allocation103_spill] sm:$0xff] %v3666_v47  ;;  %v3680_v43 = vmul.f32 %v2942_v1, %v3498_v11  ;;  %v3690_v47 = vmul.f32 %v2945_v2, %v3498_v11  ;;  %v5776_v1 = vcombine.high %v2952_v6, %v2952_v6 }
  0xb9   :  { %5766 = vst [vmem:[#allocation104_spill] sm:$0xff] %v3670_v42  ;;  %5768 = vst [vmem:[#allocation105_spill] sm:$0xff] %v3676_v51  ;;  %v3696_v55 = vmul.f32 %v5773_v61, %v3498_v11  ;;  %v3700_v51 = vmul.f32 %v2952_v6, %v3498_v11  ;;  %v5779_v2 = vcombine.high %v2955_v7, %v2955_v7 }
  0xba   :  { %5769 = vst [vmem:[#allocation106_spill] sm:$0xff] %v3680_v43  ;;  %5771 = vst [vmem:[#allocation107_spill] sm:$0xff] %v3686_v52  ;;  %v3706_v56 = vmul.f32 %v5776_v1, %v3498_v11  ;;  %v3710_v52 = vmul.f32 %v2955_v7, %v3498_v11  ;;  %v5782_v6 = vcombine.high %v2962_v12, %v2962_v12  ;;  %v5959_v43 = vld [vmem:[#allocation50_spill] sm:$0xff] }
  0xbb   :  { %5772 = vst [vmem:[#allocation108_spill] sm:$0xff] %v3690_v47  ;;  %5774 = vst [vmem:[#allocation109_spill] sm:$0xff] %v3696_v55  ;;  %v3716_v61 = vmul.f32 %v5779_v2, %v3498_v11  ;;  %v3720_v55 = vmul.f32 %v2962_v12, %v3498_v11  ;;  %v5785_v7 = vcombine.high %v2967_v16, %v2967_v16 }
  0xbc   :  { %5775 = vst [vmem:[#allocation110_spill] sm:$0xff] %v3700_v51  ;;  %5777 = vst [vmem:[#allocation111_spill] sm:$0xff] %v3706_v56  ;;  %v3726_v1 = vmul.f32 %v5782_v6, %v3498_v11  ;;  %v3730_v56 = vmul.f32 %v2967_v16, %v3498_v11  ;;  %v5788_v12 = vcombine.high %v2970_v17, %v2970_v17  ;;  %v5957_v51 = vld [vmem:[#allocation49_spill] sm:$0xff] }
  0xbd   :  { %5778 = vst [vmem:[#allocation112_spill] sm:$0xff] %v3710_v52  ;;  %5780 = vst [vmem:[#allocation113_spill] sm:$0xff] %v3716_v61  ;;  %v3736_v2 = vmul.f32 %v5785_v7, %v3498_v11  ;;  %v3740_v61 = vmul.f32 %v2970_v17, %v3498_v11  ;;  %v5791_v16 = vcombine.high %v2977_v29, %v2977_v29 }
  0xbe   :  { %5781 = vst [vmem:[#allocation114_spill] sm:$0xff] %v3720_v55  ;;  %5783 = vst [vmem:[#allocation115_spill] sm:$0xff] %v3726_v1  ;;  %v3746_v6 = vmul.f32 %v5788_v12, %v3498_v11  ;;  %v3750_v1 = vmul.f32 %v2977_v29, %v3498_v11  ;;  %v5794_v17 = vcombine.high %v2980_v30, %v2980_v30  ;;  %v5955_v55 = vld [vmem:[#allocation48_spill] sm:$0xff] }
  0xbf   :  { %5784 = vst [vmem:[#allocation116_spill] sm:$0xff] %v3730_v56  ;;  %5786 = vst [vmem:[#allocation117_spill] sm:$0xff] %v3736_v2  ;;  %v3756_v7 = vmul.f32 %v5791_v16, %v3498_v11  ;;  %v3760_v2 = vmul.f32 %v2980_v30, %v3498_v11  ;;  %v5797_v29 = vcombine.high %v2987_v39, %v2987_v39 }
  0xc0   :  { %5787 = vst [vmem:[#allocation118_spill] sm:$0xff] %v3740_v61  ;;  %5789 = vst [vmem:[#allocation119_spill] sm:$0xff] %v3746_v6  ;;  %v3766_v12 = vmul.f32 %v5794_v17, %v3498_v11  ;;  %v3770_v6 = vmul.f32 %v2987_v39, %v3498_v11  ;;  %v5800_v30 = vcombine.high %v2992_v49, %v2992_v49  ;;  %v5953_v61 = vld [vmem:[#allocation47_spill] sm:$0xff] }
  0xc1   :  { %5790 = vst [vmem:[#allocation120_spill] sm:$0xff] %v3750_v1  ;;  %5792 = vst [vmem:[#allocation121_spill] sm:$0xff] %v3756_v7  ;;  %v3776_v16 = vmul.f32 %v5797_v29, %v3498_v11  ;;  %v3780_v7 = vmul.f32 %v2992_v49, %v3498_v11  ;;  %v5803_v39 = vcombine.high %v2995_v57, %v2995_v57 }
  0xc2   :  { %5793 = vst [vmem:[#allocation122_spill] sm:$0xff] %v3760_v2  ;;  %5795 = vst [vmem:[#allocation123_spill] sm:$0xff] %v3766_v12  ;;  %v3786_v17 = vmul.f32 %v5800_v30, %v3498_v11  ;;  %v3790_v12 = vmul.f32 %v2995_v57, %v3498_v11  ;;  %v5806_v49 = vcombine.high %v3002_v58, %v3002_v58  ;;  %v5951_v2 = vld [vmem:[#allocation46_spill] sm:$0xff] }
  0xc3   :  { %5796 = vst [vmem:[#allocation124_spill] sm:$0xff] %v3770_v6  ;;  %5798 = vst [vmem:[#allocation125_spill] sm:$0xff] %v3776_v16  ;;  %v3796_v29 = vmul.f32 %v5803_v39, %v3498_v11  ;;  %v3800_v16 = vmul.f32 %v3002_v58, %v3498_v11  ;;  %v5809_v57 = vcombine.high %v3009_v63, %v3009_v63 }
  0xc4   :  { %5799 = vst [vmem:[#allocation126_spill] sm:$0xff] %v3780_v7  ;;  %5801 = vst [vmem:[#allocation127_spill] sm:$0xff] %v3786_v17  ;;  %v3806_v30 = vmul.f32 %v5806_v49, %v3498_v11  ;;  %v3810_v17 = vmul.f32 %v3009_v63, %v3498_v11  ;;  %v5812_v58 = vcombine.high %v3014_v38, %v3014_v38  ;;  %v5949_v7 = vld [vmem:[#allocation45_spill] sm:$0xff] }
  0xc5   :  { %5802 = vst [vmem:[#allocation128_spill] sm:$0xff] %v3790_v12  ;;  %5804 = vst [vmem:[#allocation129_spill] sm:$0xff] %v3796_v29  ;;  %v3816_v39 = vmul.f32 %v5809_v57, %v3498_v11  ;;  %v3820_v29 = vmul.f32 %v3014_v38, %v3498_v11  ;;  %v5815_v63 = vcombine.high %v3017_v19, %v3017_v19 }
  0xc6   :  { %5805 = vst [vmem:[#allocation130_spill] sm:$0xff] %v3800_v16  ;;  %5807 = vst [vmem:[#allocation131_spill] sm:$0xff] %v3806_v30  ;;  %v3826_v49 = vmul.f32 %v5812_v58, %v3498_v11  ;;  %v3830_v30 = vmul.f32 %v3017_v19, %v3498_v11  ;;  %v5818_v38 = vcombine.high %v3024_v13, %v3024_v13  ;;  %v5947_v16 = vld [vmem:[#allocation44_spill] sm:$0xff] }
  0xc7   :  { %5808 = vst [vmem:[#allocation132_spill] sm:$0xff] %v3810_v17  ;;  %5810 = vst [vmem:[#allocation133_spill] sm:$0xff] %v3816_v39  ;;  %v3836_v57 = vmul.f32 %v5815_v63, %v3498_v11  ;;  %v3840_v39 = vmul.f32 %v3024_v13, %v3498_v11  ;;  %v5821_v19 = vcombine.high %v3027_v5, %v3027_v5 }
  0xc8   :  { %5811 = vst [vmem:[#allocation134_spill] sm:$0xff] %v3820_v29  ;;  %5813 = vst [vmem:[#allocation135_spill] sm:$0xff] %v3826_v49  ;;  %v3846_v58 = vmul.f32 %v5818_v38, %v3498_v11  ;;  %v3850_v49 = vmul.f32 %v3027_v5, %v3498_v11  ;;  %v5824_v13 = vcombine.high %v3032_v14, %v3032_v14  ;;  %v5945_v29 = vld [vmem:[#allocation43_spill] sm:$0xff] }
  0xc9   :  { %5814 = vst [vmem:[#allocation136_spill] sm:$0xff] %v3830_v30  ;;  %5816 = vst [vmem:[#allocation137_spill] sm:$0xff] %v3836_v57  ;;  %v3856_v63 = vmul.f32 %v5821_v19, %v3498_v11  ;;  %v3860_v57 = vmul.f32 %v3032_v14, %v3498_v11  ;;  %v5827_v5 = vcombine.high %v3035_v4, %v3035_v4 }
  0xca   :  { %5817 = vst [vmem:[#allocation138_spill] sm:$0xff] %v3840_v39  ;;  %5819 = vst [vmem:[#allocation139_spill] sm:$0xff] %v3846_v58  ;;  %v3866_v38 = vmul.f32 %v5824_v13, %v3498_v11  ;;  %v3870_v58 = vmul.f32 %v3035_v4, %v3498_v11 }
  0xcb   :  { %5820 = vst [vmem:[#allocation140_spill] sm:$0xff] %v3850_v49  ;;  %5822 = vst [vmem:[#allocation141_spill] sm:$0xff] %v3856_v63  ;;  %v3876_v19 = vmul.f32 %v5827_v5, %v3498_v11  ;;  %v5829_v63 = vld [vmem:[#allocation12_spill] sm:$0xff] }
  0xcc   :  { %5823 = vst [vmem:[#allocation142_spill] sm:$0xff] %v3860_v57  ;;  %5825 = vst [vmem:[#allocation143_spill] sm:$0xff] %v3866_v38  ;;  %v3880_v49 = vmul.f32 %v5829_v63, %v3498_v11  ;;  %v5831_v14 = vcombine.high %v5829_v63, %v5829_v63  ;;  %v5833_v38 = vld [vmem:[#allocation13_spill] sm:$0xff] }
  0xcd   :  { %5826 = vst [vmem:[#allocation144_spill] sm:$0xff] %v3870_v58  ;;  %5828 = vst [vmem:[#allocation145_spill] sm:$0xff] %v3876_v19  ;;  %v3890_v57 = vmul.f32 %v5833_v38, %v3498_v11  ;;  %v5835_v4 = vcombine.high %v5833_v38, %v5833_v38  ;;  %v5837_v19 = vld [vmem:[#allocation14_spill] sm:$0xff] }
  0xce   :  { %5830 = vst [vmem:[#allocation12_spill] sm:$0xff] %v3880_v49  ;;  %v3886_v13 = vmul.f32 %v5831_v14, %v3498_v11  ;;  %v3900_v58 = vmul.f32 %v5837_v19, %v3498_v11  ;;  %v5839_v63 = vcombine.high %v5837_v19, %v5837_v19 }
  0xcf   :  { %5834 = vst [vmem:[#allocation13_spill] sm:$0xff] %v3890_v57  ;;  %v3896_v5 = vmul.f32 %v5835_v4, %v3498_v11 }
  0xd0   :  { %5832 = vst [vmem:[#allocation146_spill] sm:$0xff] %v3886_v13  ;;  %5838 = vst [vmem:[#allocation14_spill] sm:$0xff] %v3900_v58  ;;  %v3906_v14 = vmul.f32 %v5839_v63, %v3498_v11  ;;  %v5841_v13 = vld [vmem:[#allocation15_spill] sm:$0xff] }
  0xd1   :  { %5836 = vst [vmem:[#allocation147_spill] sm:$0xff] %v3896_v5  ;;  %v3910_v49 = vmul.f32 %v5841_v13, %v3498_v11  ;;  %v5843_v38 = vcombine.high %v5841_v13, %v5841_v13  ;;  %v5845_v5 = vld [vmem:[#allocation16_spill] sm:$0xff] }
  0xd2   :  { %5840 = vst [vmem:[#allocation148_spill] sm:$0xff] %v3906_v14  ;;  %v3920_v57 = vmul.f32 %v5845_v5, %v3498_v11  ;;  %v5847_v19 = vcombine.high %v5845_v5, %v5845_v5  ;;  %v5849_v14 = vld [vmem:[#allocation17_spill] sm:$0xff] }
  0xd3   :  { %5842 = vst [vmem:[#allocation15_spill] sm:$0xff] %v3910_v49  ;;  %v3916_v4 = vmul.f32 %v5843_v38, %v3498_v11  ;;  %v3930_v58 = vmul.f32 %v5849_v14, %v3498_v11  ;;  %v5851_v13 = vcombine.high %v5849_v14, %v5849_v14 }
  0xd4   :  { %5846 = vst [vmem:[#allocation16_spill] sm:$0xff] %v3920_v57  ;;  %v3926_v63 = vmul.f32 %v5847_v19, %v3498_v11 }
  0xd5   :  { %5844 = vst [vmem:[#allocation149_spill] sm:$0xff] %v3916_v4  ;;  %5850 = vst [vmem:[#allocation17_spill] sm:$0xff] %v3930_v58  ;;  %v3936_v38 = vmul.f32 %v5851_v13, %v3498_v11  ;;  %v5853_v4 = vld [vmem:[#allocation18_spill] sm:$0xff] }
  0xd6   :  { %5848 = vst [vmem:[#allocation150_spill] sm:$0xff] %v3926_v63  ;;  %v3940_v49 = vmul.f32 %v5853_v4, %v3498_v11  ;;  %v5855_v5 = vcombine.high %v5853_v4, %v5853_v4  ;;  %v5857_v63 = vld [vmem:[#allocation19_spill] sm:$0xff] }
  0xd7   :  { %5852 = vst [vmem:[#allocation151_spill] sm:$0xff] %v3936_v38  ;;  %v3950_v57 = vmul.f32 %v5857_v63, %v3498_v11  ;;  %v5859_v14 = vcombine.high %v5857_v63, %v5857_v63  ;;  %v5861_v38 = vld [vmem:[#allocation20_spill] sm:$0xff] }
  0xd8   :  { %5854 = vst [vmem:[#allocation18_spill] sm:$0xff] %v3940_v49  ;;  %v3946_v19 = vmul.f32 %v5855_v5, %v3498_v11  ;;  %v3960_v58 = vmul.f32 %v5861_v38, %v3498_v11  ;;  %v5863_v4 = vcombine.high %v5861_v38, %v5861_v38 }
  0xd9   :  { %5858 = vst [vmem:[#allocation19_spill] sm:$0xff] %v3950_v57  ;;  %v3956_v13 = vmul.f32 %v5859_v14, %v3498_v11 }
  0xda   :  { %5856 = vst [vmem:[#allocation152_spill] sm:$0xff] %v3946_v19  ;;  %5862 = vst [vmem:[#allocation20_spill] sm:$0xff] %v3960_v58  ;;  %v3966_v5 = vmul.f32 %v5863_v4, %v3498_v11  ;;  %v5865_v19 = vld [vmem:[#allocation21_spill] sm:$0xff] }
  0xdb   :  { %5860 = vst [vmem:[#allocation153_spill] sm:$0xff] %v3956_v13  ;;  %v3970_v49 = vmul.f32 %v5865_v19, %v3498_v11  ;;  %v5867_v63 = vcombine.high %v5865_v19, %v5865_v19  ;;  %v5869_v13 = vld [vmem:[#allocation22_spill] sm:$0xff] }
  0xdc   :  { %5864 = vst [vmem:[#allocation154_spill] sm:$0xff] %v3966_v5  ;;  %v3980_v57 = vmul.f32 %v5869_v13, %v3498_v11  ;;  %v5871_v38 = vcombine.high %v5869_v13, %v5869_v13  ;;  %v5873_v5 = vld [vmem:[#allocation23_spill] sm:$0xff] }
  0xdd   :  { %5866 = vst [vmem:[#allocation21_spill] sm:$0xff] %v3970_v49  ;;  %v3976_v14 = vmul.f32 %v5867_v63, %v3498_v11  ;;  %v3990_v58 = vmul.f32 %v5873_v5, %v3498_v11  ;;  %v5875_v19 = vcombine.high %v5873_v5, %v5873_v5 }
  0xde   :  { %5870 = vst [vmem:[#allocation22_spill] sm:$0xff] %v3980_v57  ;;  %v3986_v4 = vmul.f32 %v5871_v38, %v3498_v11 }
  0xdf   :  { %5868 = vst [vmem:[#allocation155_spill] sm:$0xff] %v3976_v14  ;;  %5874 = vst [vmem:[#allocation23_spill] sm:$0xff] %v3990_v58  ;;  %v3996_v63 = vmul.f32 %v5875_v19, %v3498_v11  ;;  %v5877_v14 = vld [vmem:[#allocation24_spill] sm:$0xff] }
  0xe0   :  { %5872 = vst [vmem:[#allocation156_spill] sm:$0xff] %v3986_v4  ;;  %v4000_v49 = vmul.f32 %v5877_v14, %v3498_v11  ;;  %v5879_v13 = vcombine.high %v5877_v14, %v5877_v14  ;;  %v5881_v4 = vld [vmem:[#allocation25_spill] sm:$0xff] }
  0xe1   :  { %5876 = vst [vmem:[#allocation157_spill] sm:$0xff] %v3996_v63  ;;  %v4010_v57 = vmul.f32 %v5881_v4, %v3498_v11  ;;  %v5883_v5 = vcombine.high %v5881_v4, %v5881_v4  ;;  %v5885_v63 = vld [vmem:[#allocation26_spill] sm:$0xff] }
  0xe2   :  { %5878 = vst [vmem:[#allocation24_spill] sm:$0xff] %v4000_v49  ;;  %v4006_v38 = vmul.f32 %v5879_v13, %v3498_v11  ;;  %v4020_v58 = vmul.f32 %v5885_v63, %v3498_v11  ;;  %v5887_v14 = vcombine.high %v5885_v63, %v5885_v63 }
  0xe3   :  { %5882 = vst [vmem:[#allocation25_spill] sm:$0xff] %v4010_v57  ;;  %v4016_v19 = vmul.f32 %v5883_v5, %v3498_v11 }
  0xe4   :  { %5880 = vst [vmem:[#allocation158_spill] sm:$0xff] %v4006_v38  ;;  %5886 = vst [vmem:[#allocation26_spill] sm:$0xff] %v4020_v58  ;;  %v4026_v13 = vmul.f32 %v5887_v14, %v3498_v11  ;;  %v5889_v38 = vld [vmem:[#allocation27_spill] sm:$0xff] }
  0xe5   :  { %5884 = vst [vmem:[#allocation159_spill] sm:$0xff] %v4016_v19  ;;  %v4030_v49 = vmul.f32 %v5889_v38, %v3498_v11  ;;  %v5891_v4 = vcombine.high %v5889_v38, %v5889_v38  ;;  %v5893_v19 = vld [vmem:[#allocation28_spill] sm:$0xff] }
  0xe6   :  { %5888 = vst [vmem:[#allocation160_spill] sm:$0xff] %v4026_v13  ;;  %v4040_v57 = vmul.f32 %v5893_v19, %v3498_v11  ;;  %v5895_v63 = vcombine.high %v5893_v19, %v5893_v19  ;;  %v5897_v13 = vld [vmem:[#allocation29_spill] sm:$0xff] }
  0xe7   :  { %5890 = vst [vmem:[#allocation27_spill] sm:$0xff] %v4030_v49  ;;  %v4036_v5 = vmul.f32 %v5891_v4, %v3498_v11  ;;  %v4050_v58 = vmul.f32 %v5897_v13, %v3498_v11  ;;  %v5899_v38 = vcombine.high %v5897_v13, %v5897_v13 }
  0xe8   :  { %5894 = vst [vmem:[#allocation28_spill] sm:$0xff] %v4040_v57  ;;  %v4046_v14 = vmul.f32 %v5895_v63, %v3498_v11 }
  0xe9   :  { %5892 = vst [vmem:[#allocation161_spill] sm:$0xff] %v4036_v5  ;;  %5898 = vst [vmem:[#allocation29_spill] sm:$0xff] %v4050_v58  ;;  %v4056_v4 = vmul.f32 %v5899_v38, %v3498_v11  ;;  %v5901_v5 = vld [vmem:[#allocation30_spill] sm:$0xff] }
  0xea   :  { %5896 = vst [vmem:[#allocation162_spill] sm:$0xff] %v4046_v14  ;;  %v4060_v49 = vmul.f32 %v5901_v5, %v3498_v11  ;;  %v5903_v19 = vcombine.high %v5901_v5, %v5901_v5  ;;  %v5905_v14 = vld [vmem:[#allocation31_spill] sm:$0xff] }
  0xeb   :  { %5900 = vst [vmem:[#allocation163_spill] sm:$0xff] %v4056_v4  ;;  %v4070_v57 = vmul.f32 %v5905_v14, %v3498_v11  ;;  %v5907_v13 = vcombine.high %v5905_v14, %v5905_v14  ;;  %v5909_v4 = vld [vmem:[#allocation32_spill] sm:$0xff] }
  0xec   :  { %5902 = vst [vmem:[#allocation30_spill] sm:$0xff] %v4060_v49  ;;  %v4066_v63 = vmul.f32 %v5903_v19, %v3498_v11  ;;  %v4080_v58 = vmul.f32 %v5909_v4, %v3498_v11  ;;  %v5911_v5 = vcombine.high %v5909_v4, %v5909_v4 }
  0xed   :  { %5906 = vst [vmem:[#allocation31_spill] sm:$0xff] %v4070_v57  ;;  %v4076_v38 = vmul.f32 %v5907_v13, %v3498_v11  ;;  %v5913_v57 = vld [vmem:[#allocation33_spill] sm:$0xff] }
  0xee   :  { %5904 = vst [vmem:[#allocation164_spill] sm:$0xff] %v4066_v63  ;;  %5910 = vst [vmem:[#allocation32_spill] sm:$0xff] %v4080_v58  ;;  %v4086_v19 = vmul.f32 %v5911_v5, %v3498_v11  ;;  %v4088_v63 = vpop.permute.xlu0 %947  ;;  %v4092_v49 = vmul.f32 %v5913_v57, %v3498_v11  ;;  %v5915_v14 = vcombine.high %v5913_v57, %v5913_v57  ;;  %v5917_v58 = vld [vmem:[#allocation34_spill] sm:$0xff] }
  0xef   :  { %5908 = vst [vmem:[#allocation165_spill] sm:$0xff] %v4076_v38  ;;  %v4102_v38 = vmul.f32 %v5917_v58, %v3498_v11  ;;  %v5919_v4 = vcombine.high %v5917_v58, %v5917_v58  ;;  %v4192_v17 = vmul.f32 %v5945_v29, %v4088_v63  ;;  %v4202_v12 = vmul.f32 %v5947_v16, %v4088_v63 }
  0xf0   :  { %5912 = vst [vmem:[#allocation166_spill] sm:$0xff] %v4086_v19  ;;  %5914 = vst [vmem:[#allocation33_spill] sm:$0xff] %v4092_v49  ;;  %v4098_v13 = vmul.f32 %v5915_v14, %v3498_v11  ;;  %v5921_v19 = vld [vmem:[#allocation35_spill] sm:$0xff]  ;;  %v4212_v6 = vmul.f32 %v5949_v7, %v4088_v63  ;;  %v4222_v1 = vmul.f32 %v5951_v2, %v4088_v63 }
  0xf1   :  { %5918 = vst [vmem:[#allocation34_spill] sm:$0xff] %v4102_v38  ;;  %v4108_v5 = vmul.f32 %v5919_v4, %v3498_v11  ;;  %v4112_v39 = vmul.f32 %v5921_v19, %v3498_v11  ;;  %v5923_v57 = vcombine.high %v5921_v19, %v5921_v19  ;;  %v4232_v56 = vmul.f32 %v5953_v61, %v4088_v63 }
  0xf2   :  { %5916 = vst [vmem:[#allocation167_spill] sm:$0xff] %v4098_v13  ;;  %v5925_v13 = vld [vmem:[#allocation36_spill] sm:$0xff]  ;;  %v4242_v52 = vmul.f32 %v5955_v55, %v4088_v63  ;;  %v4252_v47 = vmul.f32 %v5957_v51, %v4088_v63  ;;  %v4262_v42 = vmul.f32 %v5959_v43, %v4088_v63  ;;  %v4272_v32 = vmul.f32 %v5963_v37, %v4088_v63 }
  0xf3   :  { %5920 = vst [vmem:[#allocation168_spill] sm:$0xff] %v4108_v5  ;;  %5922 = vst [vmem:[#allocation35_spill] sm:$0xff] %v4112_v39  ;;  %v4118_v14 = vmul.f32 %v5923_v57, %v3498_v11  ;;  %v4122_v49 = vmul.f32 %v5925_v13, %v3498_v11  ;;  %v5927_v58 = vcombine.high %v5925_v13, %v5925_v13  ;;  %v5929_v5 = vld [vmem:[#allocation37_spill] sm:$0xff] }
  0xf4   :  { %v4132_v38 = vmul.f32 %v5929_v5, %v3498_v11  ;;  %v5931_v19 = vcombine.high %v5929_v5, %v5929_v5  ;;  %v4282_v28 = vmul.f32 %v5967_v25, %v4088_v63 }
  0xf5   :  { %5924 = vst [vmem:[#allocation169_spill] sm:$0xff] %v4118_v14  ;;  %5926 = vst [vmem:[#allocation36_spill] sm:$0xff] %v4122_v49  ;;  %v4128_v4 = vmul.f32 %v5927_v58, %v3498_v11  ;;  %v5933_v14 = vld [vmem:[#allocation38_spill] sm:$0xff] }
  0xf6   :  { %5930 = vst [vmem:[#allocation37_spill] sm:$0xff] %v4132_v38  ;;  %v4138_v57 = vmul.f32 %v5931_v19, %v3498_v11  ;;  %v4142_v39 = vmul.f32 %v5933_v14, %v3498_v11  ;;  %v5935_v13 = vcombine.high %v5933_v14, %v5933_v14  ;;  %5968 = vst [vmem:[#allocation43_spill] sm:$0xff] %v4282_v28 }
  0xf7   :  { %5928 = vst [vmem:[#allocation170_spill] sm:$0xff] %v4128_v4  ;;  %v5937_v4 = vld [vmem:[#allocation39_spill] sm:$0xff] }
  0xf8   :  { %5932 = vst [vmem:[#allocation171_spill] sm:$0xff] %v4138_v57  ;;  %5934 = vst [vmem:[#allocation38_spill] sm:$0xff] %v4142_v39  ;;  %v4148_v58 = vmul.f32 %v5935_v13, %v3498_v11  ;;  %v4152_v49 = vmul.f32 %v5937_v4, %v4088_v63  ;;  %v5938_v5 = vcombine.high %v5937_v4, %v5937_v4  ;;  %v5939_v57 = vld [vmem:[#allocation40_spill] sm:$0xff]  ;;  %v5941_v13 = vld [vmem:[#allocation41_spill] sm:$0xff] }
  0xf9   :  { %v4162_v38 = vmul.f32 %v5939_v57, %v4088_v63  ;;  %v5940_v14 = vcombine.high %v5939_v57, %v5939_v57  ;;  %v5942_v4 = vcombine.high %v5941_v13, %v5941_v13  ;;  %v5943_v39 = vld [vmem:[#allocation42_spill] sm:$0xff]  ;;  %5960 = vst [vmem:[#allocation39_spill] sm:$0xff] %v4262_v42  ;;  %5964 = vst [vmem:[#allocation41_spill] sm:$0xff] %v4272_v32 }
  0xfa   :  { %5936 = vst [vmem:[#allocation172_spill] sm:$0xff] %v4148_v58  ;;  %v4158_v19 = vmul.f32 %v5938_v5, %v4088_v63  ;;  %v4172_v58 = vmul.f32 %v5941_v13, %v4088_v63  ;;  %v4182_v30 = vmul.f32 %v5943_v39, %v4088_v63  ;;  %v5944_v57 = vcombine.high %v5943_v39, %v5943_v39 }
  0xfb   :  { %v4168_v11 = vmul.f32 %v5940_v14, %v4088_v63  ;;  %v4178_v5 = vmul.f32 %v5942_v4, %v4088_v63  ;;  %v5946_v13 = vcombine.high %v5945_v29, %v5945_v29  ;;  %v5948_v39 = vcombine.high %v5947_v16, %v5947_v16 }
  0xfc   :  { %v4188_v14 = vmul.f32 %v5944_v57, %v4088_v63  ;;  %v5950_v29 = vcombine.high %v5949_v7, %v5949_v7  ;;  %v5952_v16 = vcombine.high %v5951_v2, %v5951_v2  ;;  %v5954_v7 = vcombine.high %v5953_v61, %v5953_v61 }
  0xfd   :  { %v4198_v4 = vmul.f32 %v5946_v13, %v4088_v63  ;;  %v4208_v57 = vmul.f32 %v5948_v39, %v4088_v63  ;;  %v5956_v2 = vcombine.high %v5955_v55, %v5955_v55  ;;  %v5958_v61 = vcombine.high %v5957_v51, %v5957_v51 }
  0xfe   :  { %v4218_v13 = vmul.f32 %v5950_v29, %v4088_v63  ;;  %v4228_v39 = vmul.f32 %v5952_v16, %v4088_v63  ;;  %v4238_v29 = vmul.f32 %v5954_v7, %v4088_v63  ;;  %v5961_v55 = vcombine.high %v5959_v43, %v5959_v43 }
  0xff   :  { %v4248_v16 = vmul.f32 %v5956_v2, %v4088_v63  ;;  %v4258_v7 = vmul.f32 %v5958_v61, %v4088_v63  ;;  %v5965_v51 = vcombine.high %v5963_v37, %v5963_v37  ;;  %v5969_v43 = vcombine.high %v5967_v25, %v5967_v25 }
 0x100   :  { %v4268_v2 = vmul.f32 %v5961_v55, %v4088_v63 }
 0x101   :  { %v4278_v61 = vmul.f32 %v5965_v51, %v4088_v63  ;;  %v4288_v55 = vmul.f32 %v5969_v43, %v4088_v63 }
 0x102   :  { %5962 = vst [vmem:[#allocation40_spill] sm:$0xff] %v4268_v2  ;;  %v5971_v2 = vld [vmem:[#allocation53_spill] sm:$0xff] }
 0x103   :  { %5966 = vst [vmem:[#allocation42_spill] sm:$0xff] %v4278_v61  ;;  %5970 = vst [vmem:[#allocation44_spill] sm:$0xff] %v4288_v55  ;;  %v4292_v42 = vmul.f32 %v5971_v2, %v4088_v63  ;;  %v5973_v37 = vcombine.high %v5971_v2, %v5971_v2  ;;  %v5975_v61 = vld [vmem:[#allocation54_spill] sm:$0xff]  ;;  %v5979_v55 = vld [vmem:[#allocation55_spill] sm:$0xff] }
 0x104   :  { %v4302_v32 = vmul.f32 %v5975_v61, %v4088_v63  ;;  %v5977_v25 = vcombine.high %v5975_v61, %v5975_v61  ;;  %v4312_v28 = vmul.f32 %v5979_v55, %v4088_v63  ;;  %v5981_v2 = vcombine.high %v5979_v55, %v5979_v55 }
 0x105   :  { %5972 = vst [vmem:[#allocation45_spill] sm:$0xff] %v4292_v42  ;;  %v4298_v51 = vmul.f32 %v5973_v37, %v4088_v63 }
 0x106   :  { %5976 = vst [vmem:[#allocation47_spill] sm:$0xff] %v4302_v32  ;;  %v4308_v43 = vmul.f32 %v5977_v25, %v4088_v63  ;;  %5980 = vst [vmem:[#allocation49_spill] sm:$0xff] %v4312_v28  ;;  %v4318_v37 = vmul.f32 %v5981_v2, %v4088_v63 }
 0x107   :  { %5974 = vst [vmem:[#allocation46_spill] sm:$0xff] %v4298_v51  ;;  %v5983_v51 = vld [vmem:[#allocation56_spill] sm:$0xff] }
 0x108   :  { %5978 = vst [vmem:[#allocation48_spill] sm:$0xff] %v4308_v43  ;;  %5982 = vst [vmem:[#allocation50_spill] sm:$0xff] %v4318_v37  ;;  %v4322_v42 = vmul.f32 %v5983_v51, %v4088_v63  ;;  %v5985_v61 = vcombine.high %v5983_v51, %v5983_v51  ;;  %v5987_v43 = vld [vmem:[#allocation57_spill] sm:$0xff]  ;;  %v5991_v37 = vld [vmem:[#allocation58_spill] sm:$0xff] }
 0x109   :  { %v4332_v32 = vmul.f32 %v5987_v43, %v4088_v63  ;;  %v5989_v55 = vcombine.high %v5987_v43, %v5987_v43  ;;  %v4342_v28 = vmul.f32 %v5991_v37, %v4088_v63  ;;  %v5993_v51 = vcombine.high %v5991_v37, %v5991_v37 }
 0x10a   :  { %5984 = vst [vmem:[#allocation51_spill] sm:$0xff] %v4322_v42  ;;  %v4328_v25 = vmul.f32 %v5985_v61, %v4088_v63 }
 0x10b   :  { %5988 = vst [vmem:[#allocation53_spill] sm:$0xff] %v4332_v32  ;;  %v4338_v2 = vmul.f32 %v5989_v55, %v4088_v63  ;;  %5992 = vst [vmem:[#allocation55_spill] sm:$0xff] %v4342_v28  ;;  %v4348_v61 = vmul.f32 %v5993_v51, %v4088_v63 }
 0x10c   :  { %5986 = vst [vmem:[#allocation52_spill] sm:$0xff] %v4328_v25  ;;  %v5995_v25 = vld [vmem:[#allocation59_spill] sm:$0xff] }
 0x10d   :  { %5990 = vst [vmem:[#allocation54_spill] sm:$0xff] %v4338_v2  ;;  %5994 = vst [vmem:[#allocation56_spill] sm:$0xff] %v4348_v61  ;;  %v4352_v42 = vmul.f32 %v5995_v25, %v4088_v63  ;;  %v5997_v43 = vcombine.high %v5995_v25, %v5995_v25  ;;  %v5999_v2 = vld [vmem:[#allocation60_spill] sm:$0xff]  ;;  %v6003_v61 = vld [vmem:[#allocation61_spill] sm:$0xff] }
 0x10e   :  { %v4362_v32 = vmul.f32 %v5999_v2, %v4088_v63  ;;  %v6001_v37 = vcombine.high %v5999_v2, %v5999_v2  ;;  %v4372_v28 = vmul.f32 %v6003_v61, %v4088_v63  ;;  %v6005_v25 = vcombine.high %v6003_v61, %v6003_v61 }
 0x10f   :  { %5996 = vst [vmem:[#allocation57_spill] sm:$0xff] %v4352_v42  ;;  %v4358_v55 = vmul.f32 %v5997_v43, %v4088_v63 }
 0x110   :  { %6000 = vst [vmem:[#allocation59_spill] sm:$0xff] %v4362_v32  ;;  %v4368_v51 = vmul.f32 %v6001_v37, %v4088_v63  ;;  %6004 = vst [vmem:[#allocation61_spill] sm:$0xff] %v4372_v28  ;;  %v4378_v43 = vmul.f32 %v6005_v25, %v4088_v63 }
 0x111   :  { %5998 = vst [vmem:[#allocation58_spill] sm:$0xff] %v4358_v55  ;;  %v6007_v55 = vld [vmem:[#allocation62_spill] sm:$0xff] }
 0x112   :  { %6002 = vst [vmem:[#allocation60_spill] sm:$0xff] %v4368_v51  ;;  %6006 = vst [vmem:[#allocation173_spill] sm:$0xff] %v4378_v43  ;;  %v4382_v42 = vmul.f32 %v6007_v55, %v4088_v63  ;;  %v6009_v2 = vcombine.high %v6007_v55, %v6007_v55  ;;  %v6011_v51 = vld [vmem:[#allocation63_spill] sm:$0xff]  ;;  %v6015_v43 = vld [vmem:[#allocation64_spill] sm:$0xff] }
 0x113   :  { %v4392_v32 = vmul.f32 %v6011_v51, %v4088_v63  ;;  %v6013_v61 = vcombine.high %v6011_v51, %v6011_v51  ;;  %v4402_v28 = vmul.f32 %v6015_v43, %v4088_v63  ;;  %v6017_v55 = vcombine.high %v6015_v43, %v6015_v43 }
 0x114   :  { %6008 = vst [vmem:[#allocation62_spill] sm:$0xff] %v4382_v42  ;;  %v4388_v37 = vmul.f32 %v6009_v2, %v4088_v63 }
 0x115   :  { %6012 = vst [vmem:[#allocation63_spill] sm:$0xff] %v4392_v32  ;;  %v4398_v25 = vmul.f32 %v6013_v61, %v4088_v63  ;;  %6016 = vst [vmem:[#allocation64_spill] sm:$0xff] %v4402_v28  ;;  %v4408_v2 = vmul.f32 %v6017_v55, %v4088_v63 }
 0x116   :  { %6010 = vst [vmem:[#allocation174_spill] sm:$0xff] %v4388_v37  ;;  %v6019_v37 = vld [vmem:[#allocation65_spill] sm:$0xff] }
 0x117   :  { %6014 = vst [vmem:[#allocation175_spill] sm:$0xff] %v4398_v25  ;;  %6018 = vst [vmem:[#allocation176_spill] sm:$0xff] %v4408_v2  ;;  %v4412_v42 = vmul.f32 %v6019_v37, %v4088_v63  ;;  %v6021_v51 = vcombine.high %v6019_v37, %v6019_v37  ;;  %v6023_v25 = vld [vmem:[#allocation66_spill] sm:$0xff]  ;;  %v6027_v2 = vld [vmem:[#allocation67_spill] sm:$0xff] }
 0x118   :  { %v4422_v32 = vmul.f32 %v6023_v25, %v4088_v63  ;;  %v6025_v43 = vcombine.high %v6023_v25, %v6023_v25  ;;  %v4432_v28 = vmul.f32 %v6027_v2, %v4088_v63  ;;  %v6029_v37 = vcombine.high %v6027_v2, %v6027_v2 }
 0x119   :  { %6020 = vst [vmem:[#allocation65_spill] sm:$0xff] %v4412_v42  ;;  %v4418_v61 = vmul.f32 %v6021_v51, %v4088_v63 }
 0x11a   :  { %6024 = vst [vmem:[#allocation66_spill] sm:$0xff] %v4422_v32  ;;  %v4428_v55 = vmul.f32 %v6025_v43, %v4088_v63  ;;  %6028 = vst [vmem:[#allocation67_spill] sm:$0xff] %v4432_v28  ;;  %v4438_v51 = vmul.f32 %v6029_v37, %v4088_v63 }
 0x11b   :  { %6022 = vst [vmem:[#allocation177_spill] sm:$0xff] %v4418_v61  ;;  %v6031_v61 = vld [vmem:[#allocation68_spill] sm:$0xff] }
 0x11c   :  { %6026 = vst [vmem:[#allocation178_spill] sm:$0xff] %v4428_v55  ;;  %6030 = vst [vmem:[#allocation179_spill] sm:$0xff] %v4438_v51  ;;  %v4442_v42 = vmul.f32 %v6031_v61, %v4088_v63  ;;  %v6033_v25 = vcombine.high %v6031_v61, %v6031_v61  ;;  %v6035_v55 = vld [vmem:[#allocation69_spill] sm:$0xff]  ;;  %v6039_v51 = vld [vmem:[#allocation70_spill] sm:$0xff] }
 0x11d   :  { %v4452_v32 = vmul.f32 %v6035_v55, %v4088_v63  ;;  %v6037_v2 = vcombine.high %v6035_v55, %v6035_v55  ;;  %v4462_v28 = vmul.f32 %v6039_v51, %v4088_v63  ;;  %v6041_v61 = vcombine.high %v6039_v51, %v6039_v51 }
 0x11e   :  { %6032 = vst [vmem:[#allocation68_spill] sm:$0xff] %v4442_v42  ;;  %v4448_v43 = vmul.f32 %v6033_v25, %v4088_v63 }
 0x11f   :  { %6036 = vst [vmem:[#allocation69_spill] sm:$0xff] %v4452_v32  ;;  %v4458_v37 = vmul.f32 %v6037_v2, %v4088_v63  ;;  %6040 = vst [vmem:[#allocation70_spill] sm:$0xff] %v4462_v28  ;;  %v4468_v25 = vmul.f32 %v6041_v61, %v4088_v63 }
 0x120   :  { %6034 = vst [vmem:[#allocation180_spill] sm:$0xff] %v4448_v43  ;;  %v6043_v43 = vld [vmem:[#allocation71_spill] sm:$0xff] }
 0x121   :  { %6038 = vst [vmem:[#allocation181_spill] sm:$0xff] %v4458_v37  ;;  %6042 = vst [vmem:[#allocation182_spill] sm:$0xff] %v4468_v25  ;;  %v4472_v42 = vmul.f32 %v6043_v43, %v4088_v63  ;;  %v6045_v55 = vcombine.high %v6043_v43, %v6043_v43  ;;  %v6047_v37 = vld [vmem:[#allocation72_spill] sm:$0xff]  ;;  %v6051_v25 = vld [vmem:[#allocation73_spill] sm:$0xff] }
 0x122   :  { %v4482_v32 = vmul.f32 %v6047_v37, %v4088_v63  ;;  %v6049_v51 = vcombine.high %v6047_v37, %v6047_v37  ;;  %v4492_v28 = vmul.f32 %v6051_v25, %v4088_v63  ;;  %v6053_v43 = vcombine.high %v6051_v25, %v6051_v25 }
 0x123   :  { %6044 = vst [vmem:[#allocation71_spill] sm:$0xff] %v4472_v42  ;;  %v4478_v2 = vmul.f32 %v6045_v55, %v4088_v63 }
 0x124   :  { %6048 = vst [vmem:[#allocation72_spill] sm:$0xff] %v4482_v32  ;;  %v4488_v61 = vmul.f32 %v6049_v51, %v4088_v63  ;;  %6052 = vst [vmem:[#allocation73_spill] sm:$0xff] %v4492_v28  ;;  %v4498_v55 = vmul.f32 %v6053_v43, %v4088_v63 }
 0x125   :  { %6046 = vst [vmem:[#allocation183_spill] sm:$0xff] %v4478_v2  ;;  %v6055_v2 = vld [vmem:[#allocation74_spill] sm:$0xff] }
 0x126   :  { %6050 = vst [vmem:[#allocation184_spill] sm:$0xff] %v4488_v61  ;;  %6054 = vst [vmem:[#allocation185_spill] sm:$0xff] %v4498_v55  ;;  %v4502_v42 = vmul.f32 %v6055_v2, %v4088_v63  ;;  %v6057_v37 = vcombine.high %v6055_v2, %v6055_v2  ;;  %v6059_v61 = vld [vmem:[#allocation75_spill] sm:$0xff]  ;;  %v6063_v55 = vld [vmem:[#allocation76_spill] sm:$0xff] }
 0x127   :  { %v4512_v32 = vmul.f32 %v6059_v61, %v4088_v63  ;;  %v6061_v25 = vcombine.high %v6059_v61, %v6059_v61  ;;  %v4522_v28 = vmul.f32 %v6063_v55, %v4088_v63  ;;  %v6065_v2 = vcombine.high %v6063_v55, %v6063_v55 }
 0x128   :  { %6056 = vst [vmem:[#allocation74_spill] sm:$0xff] %v4502_v42  ;;  %v4508_v51 = vmul.f32 %v6057_v37, %v4088_v63 }
 0x129   :  { %6060 = vst [vmem:[#allocation75_spill] sm:$0xff] %v4512_v32  ;;  %v4518_v43 = vmul.f32 %v6061_v25, %v4088_v63  ;;  %6064 = vst [vmem:[#allocation76_spill] sm:$0xff] %v4522_v28  ;;  %v4528_v37 = vmul.f32 %v6065_v2, %v4088_v63 }
 0x12a   :  { %6058 = vst [vmem:[#allocation186_spill] sm:$0xff] %v4508_v51  ;;  %v6067_v51 = vld [vmem:[#allocation77_spill] sm:$0xff] }
 0x12b   :  { %6062 = vst [vmem:[#allocation187_spill] sm:$0xff] %v4518_v43  ;;  %6066 = vst [vmem:[#allocation188_spill] sm:$0xff] %v4528_v37  ;;  %v4532_v42 = vmul.f32 %v6067_v51, %v4088_v63  ;;  %v6069_v61 = vcombine.high %v6067_v51, %v6067_v51  ;;  %v6071_v43 = vld [vmem:[#allocation78_spill] sm:$0xff]  ;;  %v6075_v37 = vld [vmem:[#allocation79_spill] sm:$0xff] }
 0x12c   :  { %v4542_v32 = vmul.f32 %v6071_v43, %v4088_v63  ;;  %v6073_v55 = vcombine.high %v6071_v43, %v6071_v43  ;;  %v4552_v28 = vmul.f32 %v6075_v37, %v4088_v63  ;;  %v6077_v51 = vcombine.high %v6075_v37, %v6075_v37 }
 0x12d   :  { %6068 = vst [vmem:[#allocation77_spill] sm:$0xff] %v4532_v42  ;;  %v4538_v25 = vmul.f32 %v6069_v61, %v4088_v63 }
 0x12e   :  { %6072 = vst [vmem:[#allocation78_spill] sm:$0xff] %v4542_v32  ;;  %v4548_v2 = vmul.f32 %v6073_v55, %v4088_v63  ;;  %6076 = vst [vmem:[#allocation79_spill] sm:$0xff] %v4552_v28  ;;  %v4558_v61 = vmul.f32 %v6077_v51, %v4088_v63 }
 0x12f   :  { %6070 = vst [vmem:[#allocation189_spill] sm:$0xff] %v4538_v25  ;;  %v6079_v25 = vld [vmem:[#allocation80_spill] sm:$0xff] }
 0x130   :  { %6074 = vst [vmem:[#allocation190_spill] sm:$0xff] %v4548_v2  ;;  %6078 = vst [vmem:[#allocation191_spill] sm:$0xff] %v4558_v61  ;;  %v4562_v42 = vmul.f32 %v6079_v25, %v4088_v63  ;;  %v6080_v43 = vcombine.high %v6079_v25, %v6079_v25  ;;  %v6082_v2 = vld [vmem:[#allocation81_spill] sm:$0xff]  ;;  %v6086_v61 = vld [vmem:[#allocation82_spill] sm:$0xff] }
 0x131   :  { %v4572_v32 = vmul.f32 %v6082_v2, %v4088_v63  ;;  %v6084_v37 = vcombine.high %v6082_v2, %v6082_v2  ;;  %v4582_v28 = vmul.f32 %v6086_v61, %v4088_v63  ;;  %v6087_v25 = vcombine.high %v6086_v61, %v6086_v61 }
 0x132   :  { %v4568_v55 = vmul.f32 %v6080_v43, %v4088_v63  ;;  %v6089_v2 = vcombine.high %v3395_v48, %v3395_v48 }
 0x133   :  { %6083 = vst [vmem:[#allocation81_spill] sm:$0xff] %v4572_v32  ;;  %v4578_v51 = vmul.f32 %v6084_v37, %v4088_v63  ;;  %v4588_v43 = vmul.f32 %v6087_v25, %v4088_v63 }
 0x134   :  { %6081 = vst [vmem:[#allocation80_spill] sm:$0xff] %v4568_v55  ;;  %v4592_v55 = vmul.f32 %v3395_v48, %v4088_v63  ;;  %v4598_v37 = vmul.f32 %v6089_v2, %v4088_v63  ;;  %v6094_v48 = vcombine.high %v3407_v35, %v3407_v35 }
 0x135   :  { %6085 = vst [vmem:[#allocation192_spill] sm:$0xff] %v4578_v51  ;;  %6088 = vst [vmem:[#allocation82_spill] sm:$0xff] %v4588_v43  ;;  %v6091_v51 = vld [vmem:[#allocation83_spill] sm:$0xff]  ;;  %v4612_v43 = vmul.f32 %v3407_v35, %v4088_v63  ;;  %v6098_v35 = vcombine.high %v3425_v36, %v3425_v36 }
 0x136   :  { %6090 = vst [vmem:[#allocation193_spill] sm:$0xff] %v4598_v37  ;;  %v4602_v32 = vmul.f32 %v6091_v51, %v4088_v63  ;;  %v6092_v61 = vcombine.high %v6091_v51, %v6091_v51  ;;  %v4618_v2 = vmul.f32 %v6094_v48, %v4088_v63  ;;  %v4622_v37 = vmul.f32 %v3412_v20, %v4088_v63 }
 0x137   :  { %v6096_v51 = vcombine.high %v3412_v20, %v3412_v20  ;;  %v4638_v48 = vmul.f32 %v6098_v35, %v4088_v63  ;;  %v6100_v20 = vcombine.high %v3430_v10, %v3430_v10 }
 0x138   :  { %v4608_v25 = vmul.f32 %v6092_v61, %v4088_v63  ;;  %6095 = vst [vmem:[#allocation194_spill] sm:$0xff] %v4618_v2  ;;  %v4642_v2 = vmul.f32 %v3430_v10, %v4088_v63  ;;  %v6104_v10 = vcombine.high %v3436_v33, %v3436_v33 }
 0x139   :  { %v4628_v61 = vmul.f32 %v6096_v51, %v4088_v63  ;;  %6099 = vst [vmem:[#allocation196_spill] sm:$0xff] %v4638_v48  ;;  %v4648_v51 = vmul.f32 %v6100_v20, %v4088_v63  ;;  %v4662_v48 = vmul.f32 %v3436_v33, %v4088_v63  ;;  %v6108_v33 = vcombine.high %v3442_v0, %v3442_v0 }
 0x13a   :  { %6093 = vst [vmem:[#allocation83_spill] sm:$0xff] %v4608_v25  ;;  %v4632_v25 = vmul.f32 %v3425_v36, %v4088_v63  ;;  %v6102_v36 = vcombine.high %v3433_v9, %v3433_v9  ;;  %v4668_v20 = vmul.f32 %v6104_v10, %v4088_v63 }
 0x13b   :  { %6097 = vst [vmem:[#allocation195_spill] sm:$0xff] %v4628_v61  ;;  %6101 = vst [vmem:[#allocation197_spill] sm:$0xff] %v4648_v51  ;;  %v4652_v61 = vmul.f32 %v3433_v9, %v4088_v63  ;;  %v4672_v51 = vmul.f32 %v3439_v59, %v4088_v63  ;;  %v6106_v9 = vcombine.high %v3439_v59, %v3439_v59 }
 0x13c   :  { %v4658_v35 = vmul.f32 %v6102_v36, %v4088_v63  ;;  %6105 = vst [vmem:[#allocation199_spill] sm:$0xff] %v4668_v20  ;;  %v4688_v10 = vmul.f32 %v6108_v33, %v4088_v63  ;;  %v4692_v20 = vmul.f32 %v3445_v53, %v4088_v63  ;;  %v6110_v59 = vcombine.high %v3445_v53, %v3445_v53 }
 0x13d   :  { %v4678_v36 = vmul.f32 %v6106_v9, %v4088_v63  ;;  %v6114_v53 = vcombine.high %v3451_v50, %v3451_v50 }
 0x13e   :  { %6103 = vst [vmem:[#allocation198_spill] sm:$0xff] %v4658_v35  ;;  %v4682_v35 = vmul.f32 %v3442_v0, %v4088_v63  ;;  %6109 = vst [vmem:[#allocation201_spill] sm:$0xff] %v4688_v10  ;;  %v4698_v9 = vmul.f32 %v6110_v59, %v4088_v63  ;;  %v6112_v0 = vcombine.high %v3448_v31, %v3448_v31 }
 0x13f   :  { %6107 = vst [vmem:[#allocation200_spill] sm:$0xff] %v4678_v36  ;;  %v4702_v36 = vmul.f32 %v3448_v31, %v4088_v63  ;;  %v4712_v10 = vmul.f32 %v3451_v50, %v4088_v63  ;;  %v4718_v59 = vmul.f32 %v6114_v53, %v4088_v63  ;;  %v6116_v31 = vcombine.high %v3454_v41, %v3454_v41 }
 0x140   :  { %6111 = vst [vmem:[#allocation202_spill] sm:$0xff] %v4698_v9  ;;  %v4708_v33 = vmul.f32 %v6112_v0, %v4088_v63  ;;  %v4722_v9 = vmul.f32 %v3454_v41, %v4088_v63  ;;  %v6118_v50 = vcombine.high %v3457_v40, %v3457_v40  ;;  %v6120_v41 = vcombine.high %v3460_v26, %v3460_v26 }
 0x141   :  { %6115 = vst [vmem:[#allocation204_spill] sm:$0xff] %v4718_v59  ;;  %v4728_v0 = vmul.f32 %v6116_v31, %v4088_v63  ;;  %v4742_v59 = vmul.f32 %v3460_v26, %v4088_v63  ;;  %v6125_v26 = vcombine.high %v3466_v23, %v3466_v23 }
 0x142   :  { %6113 = vst [vmem:[#allocation203_spill] sm:$0xff] %v4708_v33  ;;  %v4732_v33 = vmul.f32 %v3457_v40, %v4088_v63  ;;  %v4738_v53 = vmul.f32 %v6118_v50, %v4088_v63  ;;  %v4748_v31 = vmul.f32 %v6120_v41, %v4088_v63  ;;  %v6122_v40 = vcombine.high %v3463_v8, %v3463_v8 }
 0x143   :  { %6117 = vst [vmem:[#allocation205_spill] sm:$0xff] %v4728_v0  ;;  %v4752_v0 = vmul.f32 %v3463_v8, %v4088_v63  ;;  %v4768_v41 = vmul.f32 %v6125_v26, %v4088_v63  ;;  %v6128_v8 = vcombine.high %v3469_v60, %v3469_v60 }
 0x144   :  { %6119 = vst [vmem:[#allocation206_spill] sm:$0xff] %v4738_v53  ;;  %6121 = vst [vmem:[#allocation207_spill] sm:$0xff] %v4748_v31  ;;  %v4758_v50 = vmul.f32 %v6122_v40, %v4088_v63  ;;  %v4762_v53 = vmul.f32 %v3466_v23, %v4088_v63  ;;  %v4772_v31 = vmul.f32 %v3469_v60, %v4088_v63 }
 0x145   :  { %6126 = vst [vmem:[#allocation210_spill] sm:$0xff] %v4768_v41  ;;  %v4778_v40 = vmul.f32 %v6128_v8, %v4088_v63  ;;  %v6130_v23 = vcombine.high %v3472_v15, %v3472_v15  ;;  %v4792_v41 = vadd.f32 %v4152_v49, %v3510_v46  ;;  %v4800_v60 = vadd.f32 %v4162_v38, %v3520_v54  ;;  %v6132_v8 = vld [vmem:[#allocation85_spill] sm:$0xff] }
 0x146   :  { %6123 = vst [vmem:[#allocation208_spill] sm:$0xff] %v4758_v50  ;;  %6124 = vst [vmem:[#allocation209_spill] sm:$0xff] %v4762_v53  ;;  %v4782_v50 = vmul.f32 %v3472_v15, %v4088_v63  ;;  %v4808_v15 = vadd.f32 %v4172_v58, %v3530_v44  ;;  %v4816_v49 = vadd.f32 %v4182_v30, %v3540_v34 }
 0x147   :  { %6127 = vst [vmem:[#allocation211_spill] sm:$0xff] %v4772_v31  ;;  %v4788_v26 = vmul.f32 %v6130_v23, %v4088_v63  ;;  %v6131_v31 = vld [vmem:[#allocation84_spill] sm:$0xff]  ;;  %v6133_v63 = vld [vmem:[#allocation86_spill] sm:$0xff]  ;;  %v4824_v38 = vadd.f32 %v4192_v17, %v3550_v3  ;;  %v4832_v58 = vadd.f32 %v4202_v12, %v3560_v45  ;;  %v4840_v30 = vadd.f32 %v4212_v6, %v3570_v62 }
 0x148   :  { %6129 = vst [vmem:[#allocation212_spill] sm:$0xff] %v4782_v50  ;;  %v4796_v53 = vadd.f32 %v4158_v19, %v6131_v31  ;;  %v4804_v50 = vadd.f32 %v4168_v11, %v6132_v8  ;;  %v4812_v46 = vadd.f32 %v4178_v5, %v6133_v63  ;;  %v6134_v19 = vld [vmem:[#allocation87_spill] sm:$0xff]  ;;  %v6135_v11 = vld [vmem:[#allocation88_spill] sm:$0xff]  ;;  %v6136_v5 = vld [vmem:[#allocation89_spill] sm:$0xff]  ;;  %v4848_v17 = vadd.f32 %v4222_v1, %v3580_v18 }
 0x149   :  { %v4820_v54 = vadd.f32 %v4188_v14, %v6134_v19  ;;  %v4828_v44 = vadd.f32 %v4198_v4, %v6135_v11  ;;  %v4836_v34 = vadd.f32 %v4208_v57, %v6136_v5  ;;  %v6137_v14 = vld [vmem:[#allocation90_spill] sm:$0xff]  ;;  %v6138_v4 = vld [vmem:[#allocation91_spill] sm:$0xff]  ;;  %v4856_v12 = vadd.f32 %v4232_v56, %v3590_v24  ;;  %v6139_v57 = vld [vmem:[#allocation92_spill] sm:$0xff] }
 0x14a   :  { %v4844_v3 = vadd.f32 %v4218_v13, %v6137_v14  ;;  %v4852_v45 = vadd.f32 %v4228_v39, %v6138_v4  ;;  %v4860_v62 = vadd.f32 %v4238_v29, %v6139_v57  ;;  %v4864_v6 = vadd.f32 %v4242_v52, %v3600_v21  ;;  %v6140_v13 = vld [vmem:[#allocation93_spill] sm:$0xff]  ;;  %v6141_v39 = vld [vmem:[#allocation94_spill] sm:$0xff]  ;;  %v6142_v56 = vld [vmem:[#allocation39_spill] sm:$0xff] }
 0x14b   :  { %v4868_v18 = vadd.f32 %v4248_v16, %v6140_v13  ;;  %v4872_v1 = vadd.f32 %v4252_v47, %v3610_v27  ;;  %v4876_v24 = vadd.f32 %v4258_v7, %v6141_v39  ;;  %v4880_v29 = vadd.f32 %v6142_v56, %v3620_v22  ;;  %v6143_v31 = vld [vmem:[#allocation95_spill] sm:$0xff]  ;;  %v6144_v23 = vld [vmem:[#allocation40_spill] sm:$0xff]  ;;  %v6146_v8 = vld [vmem:[#allocation41_spill] sm:$0xff] }
 0x14c   :  { %v4884_v21 = vadd.f32 %v6144_v23, %v6143_v31  ;;  %v6145_v52 = vld [vmem:[#allocation96_spill] sm:$0xff]  ;;  %v6147_v63 = vld [vmem:[#allocation97_spill] sm:$0xff]  ;;  %v6148_v19 = vld [vmem:[#allocation42_spill] sm:$0xff] }
 0x14d   :  { %v4888_v16 = vadd.f32 %v6146_v8, %v6145_v52  ;;  %v4892_v27 = vadd.f32 %v6148_v19, %v6147_v63  ;;  %v6149_v47 = vld [vmem:[#allocation98_spill] sm:$0xff]  ;;  %v6150_v11 = vld [vmem:[#allocation43_spill] sm:$0xff]  ;;  %v6153_v14 = vld [vmem:[#allocation44_spill] sm:$0xff] }
 0x14e   :  { %v4896_v7 = vadd.f32 %v6150_v11, %v6149_v47  ;;  %v6152_v5 = vld [vmem:[#allocation99_spill] sm:$0xff]  ;;  %v6155_v4 = vld [vmem:[#allocation100_spill] sm:$0xff]  ;;  %v6156_v57 = vld [vmem:[#allocation45_spill] sm:$0xff] }
 0x14f   :  { %v4900_v22 = vadd.f32 %v6153_v14, %v6152_v5  ;;  %v4904_v13 = vadd.f32 %v6156_v57, %v6155_v4  ;;  %v6158_v39 = vld [vmem:[#allocation101_spill] sm:$0xff]  ;;  %v6159_v56 = vld [vmem:[#allocation46_spill] sm:$0xff]  ;;  %v6162_v52 = vld [vmem:[#allocation47_spill] sm:$0xff] }
 0x150   :  { %6151 = vst [vmem:[#allocation84_spill] sm:$0xff] %v4896_v7  ;;  %v4908_v31 = vadd.f32 %v6159_v56, %v6158_v39  ;;  %v6161_v23 = vld [vmem:[#allocation102_spill] sm:$0xff]  ;;  %v6164_v63 = vld [vmem:[#allocation103_spill] sm:$0xff]  ;;  %v6165_v19 = vld [vmem:[#allocation48_spill] sm:$0xff] }
 0x151   :  { %6154 = vst [vmem:[#allocation85_spill] sm:$0xff] %v4900_v22  ;;  %6157 = vst [vmem:[#allocation86_spill] sm:$0xff] %v4904_v13  ;;  %v4912_v8 = vadd.f32 %v6162_v52, %v6161_v23  ;;  %v4916_v47 = vadd.f32 %v6165_v19, %v6164_v63  ;;  %v6167_v11 = vld [vmem:[#allocation104_spill] sm:$0xff]  ;;  %v6168_v7 = vld [vmem:[#allocation49_spill] sm:$0xff] }
 0x152   :  { %6160 = vst [vmem:[#allocation87_spill] sm:$0xff] %v4908_v31  ;;  %v4920_v5 = vadd.f32 %v6168_v7, %v6167_v11  ;;  %v6170_v14 = vld [vmem:[#allocation105_spill] sm:$0xff]  ;;  %v6171_v22 = vld [vmem:[#allocation50_spill] sm:$0xff]  ;;  %v6174_v13 = vld [vmem:[#allocation51_spill] sm:$0xff] }
 0x153   :  { %6163 = vst [vmem:[#allocation88_spill] sm:$0xff] %v4912_v8  ;;  %6166 = vst [vmem:[#allocation89_spill] sm:$0xff] %v4916_v47  ;;  %v4924_v4 = vadd.f32 %v6171_v22, %v6170_v14  ;;  %v6173_v57 = vld [vmem:[#allocation106_spill] sm:$0xff]  ;;  %v6176_v56 = vld [vmem:[#allocation107_spill] sm:$0xff] }
 0x154   :  { %6169 = vst [vmem:[#allocation90_spill] sm:$0xff] %v4920_v5  ;;  %v4928_v39 = vadd.f32 %v6174_v13, %v6173_v57  ;;  %v6177_v31 = vld [vmem:[#allocation52_spill] sm:$0xff]  ;;  %v6180_v8 = vld [vmem:[#allocation53_spill] sm:$0xff]  ;;  %v6183_v47 = vld [vmem:[#allocation54_spill] sm:$0xff] }
 0x155   :  { %6172 = vst [vmem:[#allocation91_spill] sm:$0xff] %v4924_v4  ;;  %v4932_v23 = vadd.f32 %v6177_v31, %v6176_v56  ;;  %v6179_v52 = vld [vmem:[#allocation108_spill] sm:$0xff]  ;;  %v6182_v19 = vld [vmem:[#allocation109_spill] sm:$0xff]  ;;  %v6185_v11 = vld [vmem:[#allocation110_spill] sm:$0xff] }
 0x156   :  { %6175 = vst [vmem:[#allocation92_spill] sm:$0xff] %v4928_v39  ;;  %v4936_v63 = vadd.f32 %v6180_v8, %v6179_v52  ;;  %v4940_v7 = vadd.f32 %v6183_v47, %v6182_v19  ;;  %v6186_v5 = vld [vmem:[#allocation55_spill] sm:$0xff]  ;;  %v6189_v4 = vld [vmem:[#allocation56_spill] sm:$0xff]  ;;  %v6192_v39 = vld [vmem:[#allocation57_spill] sm:$0xff] }
 0x157   :  { %6178 = vst [vmem:[#allocation93_spill] sm:$0xff] %v4932_v23  ;;  %v4944_v22 = vadd.f32 %v6186_v5, %v6185_v11  ;;  %v6188_v14 = vld [vmem:[#allocation111_spill] sm:$0xff]  ;;  %v6191_v57 = vld [vmem:[#allocation112_spill] sm:$0xff]  ;;  %v6194_v56 = vld [vmem:[#allocation113_spill] sm:$0xff] }
 0x158   :  { %6181 = vst [vmem:[#allocation94_spill] sm:$0xff] %v4936_v63  ;;  %6184 = vst [vmem:[#allocation39_spill] sm:$0xff] %v4940_v7  ;;  %v4948_v13 = vadd.f32 %v6189_v4, %v6188_v14  ;;  %v4952_v31 = vadd.f32 %v6192_v39, %v6191_v57  ;;  %v6195_v23 = vld [vmem:[#allocation58_spill] sm:$0xff]  ;;  %v6198_v63 = vld [vmem:[#allocation59_spill] sm:$0xff] }
 0x159   :  { %6187 = vst [vmem:[#allocation95_spill] sm:$0xff] %v4944_v22  ;;  %v4956_v8 = vadd.f32 %v6195_v23, %v6194_v56  ;;  %v6197_v52 = vld [vmem:[#allocation114_spill] sm:$0xff]  ;;  %v6200_v19 = vld [vmem:[#allocation115_spill] sm:$0xff]  ;;  %v6201_v7 = vld [vmem:[#allocation60_spill] sm:$0xff] }
 0x15a   :  { %6190 = vst [vmem:[#allocation40_spill] sm:$0xff] %v4948_v13  ;;  %6193 = vst [vmem:[#allocation96_spill] sm:$0xff] %v4952_v31  ;;  %v4960_v47 = vadd.f32 %v6198_v63, %v6197_v52  ;;  %v4964_v5 = vadd.f32 %v6201_v7, %v6200_v19  ;;  %v6203_v11 = vld [vmem:[#allocation116_spill] sm:$0xff]  ;;  %v6204_v22 = vld [vmem:[#allocation61_spill] sm:$0xff] }
 0x15b   :  { %6196 = vst [vmem:[#allocation41_spill] sm:$0xff] %v4956_v8  ;;  %v4968_v4 = vadd.f32 %v6204_v22, %v6203_v11  ;;  %v6206_v14 = vld [vmem:[#allocation117_spill] sm:$0xff]  ;;  %v6209_v57 = vld [vmem:[#allocation118_spill] sm:$0xff]  ;;  %v6212_v56 = vld [vmem:[#allocation119_spill] sm:$0xff] }
 0x15c   :  { %6199 = vst [vmem:[#allocation97_spill] sm:$0xff] %v4960_v47  ;;  %6202 = vst [vmem:[#allocation42_spill] sm:$0xff] %v4964_v5  ;;  %v6207_v13 = vld [vmem:[#allocation173_spill] sm:$0xff]  ;;  %v6210_v31 = vld [vmem:[#allocation62_spill] sm:$0xff] }
 0x15d   :  { %6205 = vst [vmem:[#allocation98_spill] sm:$0xff] %v4968_v4  ;;  %v4972_v39 = vadd.f32 %v6207_v13, %v6206_v14  ;;  %v4976_v23 = vadd.f32 %v6210_v31, %v6209_v57  ;;  %v6213_v8 = vld [vmem:[#allocation174_spill] sm:$0xff]  ;;  %v6215_v52 = vld [vmem:[#allocation120_spill] sm:$0xff]  ;;  %v6216_v47 = vld [vmem:[#allocation63_spill] sm:$0xff] }
 0x15e   :  { %v4980_v63 = vadd.f32 %v6213_v8, %v6212_v56  ;;  %v4984_v7 = vadd.f32 %v6216_v47, %v6215_v52  ;;  %v6218_v19 = vld [vmem:[#allocation121_spill] sm:$0xff]  ;;  %v6219_v5 = vld [vmem:[#allocation175_spill] sm:$0xff]  ;;  %v6221_v11 = vld [vmem:[#allocation122_spill] sm:$0xff] }
 0x15f   :  { %6208 = vst [vmem:[#allocation43_spill] sm:$0xff] %v4972_v39  ;;  %6211 = vst [vmem:[#allocation99_spill] sm:$0xff] %v4976_v23  ;;  %v4988_v22 = vadd.f32 %v6219_v5, %v6218_v19  ;;  %v6222_v4 = vld [vmem:[#allocation64_spill] sm:$0xff]  ;;  %v6224_v14 = vld [vmem:[#allocation123_spill] sm:$0xff] }
 0x160   :  { %6214 = vst [vmem:[#allocation44_spill] sm:$0xff] %v4980_v63  ;;  %6217 = vst [vmem:[#allocation100_spill] sm:$0xff] %v4984_v7  ;;  %v4992_v13 = vadd.f32 %v6222_v4, %v6221_v11  ;;  %v6225_v39 = vld [vmem:[#allocation176_spill] sm:$0xff]  ;;  %v6228_v23 = vld [vmem:[#allocation65_spill] sm:$0xff] }
 0x161   :  { %6220 = vst [vmem:[#allocation45_spill] sm:$0xff] %v4988_v22  ;;  %v4996_v31 = vadd.f32 %v6225_v39, %v6224_v14  ;;  %v6227_v57 = vld [vmem:[#allocation124_spill] sm:$0xff]  ;;  %v6230_v56 = vld [vmem:[#allocation125_spill] sm:$0xff]  ;;  %v6233_v52 = vld [vmem:[#allocation126_spill] sm:$0xff] }
 0x162   :  { %6223 = vst [vmem:[#allocation101_spill] sm:$0xff] %v4992_v13  ;;  %v5000_v8 = vadd.f32 %v6228_v23, %v6227_v57  ;;  %v6231_v63 = vld [vmem:[#allocation177_spill] sm:$0xff]  ;;  %v6234_v7 = vld [vmem:[#allocation66_spill] sm:$0xff]  ;;  %v6236_v19 = vld [vmem:[#allocation127_spill] sm:$0xff] }
 0x163   :  { %6226 = vst [vmem:[#allocation46_spill] sm:$0xff] %v4996_v31  ;;  %v5004_v47 = vadd.f32 %v6231_v63, %v6230_v56  ;;  %v5008_v5 = vadd.f32 %v6234_v7, %v6233_v52  ;;  %v6237_v22 = vld [vmem:[#allocation178_spill] sm:$0xff]  ;;  %v6239_v11 = vld [vmem:[#allocation128_spill] sm:$0xff]  ;;  %v6240_v13 = vld [vmem:[#allocation67_spill] sm:$0xff] }
 0x164   :  { %6229 = vst [vmem:[#allocation102_spill] sm:$0xff] %v5000_v8  ;;  %v5012_v4 = vadd.f32 %v6237_v22, %v6236_v19  ;;  %v5016_v39 = vadd.f32 %v6240_v13, %v6239_v11  ;;  %v6242_v14 = vld [vmem:[#allocation129_spill] sm:$0xff]  ;;  %v6243_v31 = vld [vmem:[#allocation179_spill] sm:$0xff]  ;;  %v6245_v57 = vld [vmem:[#allocation130_spill] sm:$0xff] }
 0x165   :  { %6232 = vst [vmem:[#allocation47_spill] sm:$0xff] %v5004_v47  ;;  %6235 = vst [vmem:[#allocation103_spill] sm:$0xff] %v5008_v5  ;;  %v5020_v23 = vadd.f32 %v6243_v31, %v6242_v14  ;;  %v6246_v8 = vld [vmem:[#allocation68_spill] sm:$0xff]  ;;  %v6248_v56 = vld [vmem:[#allocation131_spill] sm:$0xff] }
 0x166   :  { %6238 = vst [vmem:[#allocation48_spill] sm:$0xff] %v5012_v4  ;;  %6241 = vst [vmem:[#allocation104_spill] sm:$0xff] %v5016_v39  ;;  %v5024_v63 = vadd.f32 %v6246_v8, %v6245_v57  ;;  %v6249_v47 = vld [vmem:[#allocation180_spill] sm:$0xff]  ;;  %v6252_v5 = vld [vmem:[#allocation69_spill] sm:$0xff] }
 0x167   :  { %6244 = vst [vmem:[#allocation49_spill] sm:$0xff] %v5020_v23  ;;  %v5028_v7 = vadd.f32 %v6249_v47, %v6248_v56  ;;  %v6251_v52 = vld [vmem:[#allocation132_spill] sm:$0xff]  ;;  %v6254_v19 = vld [vmem:[#allocation133_spill] sm:$0xff]  ;;  %v6257_v11 = vld [vmem:[#allocation134_spill] sm:$0xff] }
 0x168   :  { %6247 = vst [vmem:[#allocation105_spill] sm:$0xff] %v5024_v63  ;;  %v5032_v22 = vadd.f32 %v6252_v5, %v6251_v52  ;;  %v6255_v4 = vld [vmem:[#allocation181_spill] sm:$0xff]  ;;  %v6258_v39 = vld [vmem:[#allocation70_spill] sm:$0xff]  ;;  %v6260_v14 = vld [vmem:[#allocation135_spill] sm:$0xff] }
 0x169   :  { %6250 = vst [vmem:[#allocation50_spill] sm:$0xff] %v5028_v7  ;;  %v5036_v13 = vadd.f32 %v6255_v4, %v6254_v19  ;;  %v5040_v31 = vadd.f32 %v6258_v39, %v6257_v11  ;;  %v6261_v23 = vld [vmem:[#allocation182_spill] sm:$0xff]  ;;  %v6263_v57 = vld [vmem:[#allocation136_spill] sm:$0xff]  ;;  %v6264_v63 = vld [vmem:[#allocation71_spill] sm:$0xff] }
 0x16a   :  { %6253 = vst [vmem:[#allocation106_spill] sm:$0xff] %v5032_v22  ;;  %v5044_v8 = vadd.f32 %v6261_v23, %v6260_v14  ;;  %v5048_v47 = vadd.f32 %v6264_v63, %v6263_v57  ;;  %v6266_v56 = vld [vmem:[#allocation137_spill] sm:$0xff]  ;;  %v6267_v7 = vld [vmem:[#allocation183_spill] sm:$0xff]  ;;  %v6269_v52 = vld [vmem:[#allocation138_spill] sm:$0xff] }
 0x16b   :  { %6256 = vst [vmem:[#allocation51_spill] sm:$0xff] %v5036_v13  ;;  %6259 = vst [vmem:[#allocation107_spill] sm:$0xff] %v5040_v31  ;;  %v5052_v5 = vadd.f32 %v6267_v7, %v6266_v56  ;;  %v6270_v22 = vld [vmem:[#allocation72_spill] sm:$0xff]  ;;  %v6272_v19 = vld [vmem:[#allocation139_spill] sm:$0xff] }
 0x16c   :  { %6262 = vst [vmem:[#allocation52_spill] sm:$0xff] %v5044_v8  ;;  %6265 = vst [vmem:[#allocation108_spill] sm:$0xff] %v5048_v47  ;;  %v5056_v4 = vadd.f32 %v6270_v22, %v6269_v52  ;;  %v6273_v13 = vld [vmem:[#allocation184_spill] sm:$0xff]  ;;  %v6276_v31 = vld [vmem:[#allocation73_spill] sm:$0xff] }
 0x16d   :  { %6268 = vst [vmem:[#allocation53_spill] sm:$0xff] %v5052_v5  ;;  %v5060_v39 = vadd.f32 %v6273_v13, %v6272_v19  ;;  %v6275_v11 = vld [vmem:[#allocation140_spill] sm:$0xff]  ;;  %v6278_v14 = vld [vmem:[#allocation141_spill] sm:$0xff]  ;;  %v6281_v57 = vld [vmem:[#allocation142_spill] sm:$0xff] }
 0x16e   :  { %6271 = vst [vmem:[#allocation109_spill] sm:$0xff] %v5056_v4  ;;  %v5064_v23 = vadd.f32 %v6276_v31, %v6275_v11  ;;  %v6279_v8 = vld [vmem:[#allocation185_spill] sm:$0xff]  ;;  %v6282_v47 = vld [vmem:[#allocation74_spill] sm:$0xff]  ;;  %v6284_v56 = vld [vmem:[#allocation143_spill] sm:$0xff] }
 0x16f   :  { %6274 = vst [vmem:[#allocation54_spill] sm:$0xff] %v5060_v39  ;;  %v5068_v63 = vadd.f32 %v6279_v8, %v6278_v14  ;;  %v5072_v7 = vadd.f32 %v6282_v47, %v6281_v57  ;;  %v6285_v5 = vld [vmem:[#allocation186_spill] sm:$0xff]  ;;  %v6287_v52 = vld [vmem:[#allocation144_spill] sm:$0xff]  ;;  %v6288_v4 = vld [vmem:[#allocation75_spill] sm:$0xff] }
 0x170   :  { %6277 = vst [vmem:[#allocation110_spill] sm:$0xff] %v5064_v23  ;;  %v5076_v22 = vadd.f32 %v6285_v5, %v6284_v56  ;;  %v5080_v13 = vadd.f32 %v6288_v4, %v6287_v52  ;;  %v6290_v19 = vld [vmem:[#allocation145_spill] sm:$0xff]  ;;  %v6291_v39 = vld [vmem:[#allocation187_spill] sm:$0xff]  ;;  %v6293_v11 = vld [vmem:[#allocation12_spill] sm:$0xff] }
 0x171   :  { %6280 = vst [vmem:[#allocation55_spill] sm:$0xff] %v5068_v63  ;;  %6283 = vst [vmem:[#allocation111_spill] sm:$0xff] %v5072_v7  ;;  %v5084_v31 = vadd.f32 %v6291_v39, %v6290_v19  ;;  %v6294_v23 = vld [vmem:[#allocation76_spill] sm:$0xff]  ;;  %v6296_v14 = vld [vmem:[#allocation146_spill] sm:$0xff] }
 0x172   :  { %6286 = vst [vmem:[#allocation56_spill] sm:$0xff] %v5076_v22  ;;  %6289 = vst [vmem:[#allocation112_spill] sm:$0xff] %v5080_v13  ;;  %v5088_v8 = vadd.f32 %v6294_v23, %v6293_v11  ;;  %v6297_v63 = vld [vmem:[#allocation188_spill] sm:$0xff]  ;;  %v6299_v57 = vld [vmem:[#allocation13_spill] sm:$0xff] }
 0x173   :  { %6292 = vst [vmem:[#allocation57_spill] sm:$0xff] %v5084_v31  ;;  %v5092_v47 = vadd.f32 %v6297_v63, %v6296_v14  ;;  %v6300_v7 = vld [vmem:[#allocation77_spill] sm:$0xff]  ;;  %v6302_v56 = vld [vmem:[#allocation147_spill] sm:$0xff]  ;;  %v6304_v52 = vld [vmem:[#allocation14_spill] sm:$0xff] }
 0x174   :  { %6295 = vst [vmem:[#allocation113_spill] sm:$0xff] %v5088_v8  ;;  %v5096_v5 = vadd.f32 %v6300_v7, %v6299_v57  ;;  %v6303_v22 = vld [vmem:[#allocation189_spill] sm:$0xff]  ;;  %v6305_v13 = vld [vmem:[#allocation78_spill] sm:$0xff]  ;;  %v6307_v19 = vld [vmem:[#allocation148_spill] sm:$0xff] }
 0x175   :  { %6298 = vst [vmem:[#allocation58_spill] sm:$0xff] %v5092_v47  ;;  %v5100_v4 = vadd.f32 %v6303_v22, %v6302_v56  ;;  %v5104_v39 = vadd.f32 %v6305_v13, %v6304_v52  ;;  %v6308_v31 = vld [vmem:[#allocation190_spill] sm:$0xff]  ;;  %v6310_v11 = vld [vmem:[#allocation15_spill] sm:$0xff]  ;;  %v6313_v14 = vld [vmem:[#allocation149_spill] sm:$0xff] }
 0x176   :  { %6301 = vst [vmem:[#allocation114_spill] sm:$0xff] %v5096_v5  ;;  %v5108_v23 = vadd.f32 %v6308_v31, %v6307_v19  ;;  %v6311_v8 = vld [vmem:[#allocation79_spill] sm:$0xff]  ;;  %v6315_v57 = vld [vmem:[#allocation16_spill] sm:$0xff]  ;;  %v6317_v56 = vld [vmem:[#allocation150_spill] sm:$0xff] }
 0x177   :  { %6306 = vst [vmem:[#allocation59_spill] sm:$0xff] %v5104_v39  ;;  %v5112_v63 = vadd.f32 %v6311_v8, %v6310_v11  ;;  %v6314_v47 = vld [vmem:[#allocation191_spill] sm:$0xff]  ;;  %v5120_v22 = vadd.f32 %v4562_v42, %v6315_v57  ;;  %v6318_v5 = vld [vmem:[#allocation80_spill] sm:$0xff]  ;;  %v6319_v52 = vld [vmem:[#allocation17_spill] sm:$0xff] }
 0x178   :  { %6309 = vst [vmem:[#allocation115_spill] sm:$0xff] %v5108_v23  ;;  %v5116_v7 = vadd.f32 %v6314_v47, %v6313_v14  ;;  %v5124_v13 = vadd.f32 %v6318_v5, %v6317_v56  ;;  %v6320_v39 = vld [vmem:[#allocation81_spill] sm:$0xff]  ;;  %v6322_v19 = vld [vmem:[#allocation151_spill] sm:$0xff]  ;;  %v6323_v23 = vld [vmem:[#allocation192_spill] sm:$0xff] }
 0x179   :  { %6312 = vst [vmem:[#allocation60_spill] sm:$0xff] %v5112_v63  ;;  %6316 = vst [vmem:[#allocation116_spill] sm:$0xff] %v5120_v22  ;;  %v5128_v31 = vadd.f32 %v6320_v39, %v6319_v52  ;;  %v5132_v8 = vadd.f32 %v6323_v23, %v6322_v19  ;;  %v6324_v11 = vld [vmem:[#allocation18_spill] sm:$0xff]  ;;  %v6326_v14 = vld [vmem:[#allocation152_spill] sm:$0xff] }
 0x17a   :  { %v5136_v47 = vadd.f32 %v4582_v28, %v6324_v11  ;;  %v6327_v63 = vld [vmem:[#allocation82_spill] sm:$0xff]  ;;  %v6328_v57 = vld [vmem:[#allocation19_spill] sm:$0xff]  ;;  %v6330_v56 = vld [vmem:[#allocation153_spill] sm:$0xff] }
 0x17b   :  { %6321 = vst [vmem:[#allocation61_spill] sm:$0xff] %v5128_v31  ;;  %v5140_v42 = vadd.f32 %v6327_v63, %v6326_v14  ;;  %v5144_v5 = vadd.f32 %v4592_v55, %v6328_v57  ;;  %v6331_v22 = vld [vmem:[#allocation193_spill] sm:$0xff]  ;;  %v6332_v52 = vld [vmem:[#allocation20_spill] sm:$0xff]  ;;  %v6334_v19 = vld [vmem:[#allocation154_spill] sm:$0xff] }
 0x17c   :  { %6325 = vst [vmem:[#allocation117_spill] sm:$0xff] %v5136_v47  ;;  %v5148_v39 = vadd.f32 %v6331_v22, %v6330_v56  ;;  %v5152_v23 = vadd.f32 %v4602_v32, %v6332_v52  ;;  %v6335_v31 = vld [vmem:[#allocation83_spill] sm:$0xff]  ;;  %v6336_v11 = vld [vmem:[#allocation21_spill] sm:$0xff]  ;;  %v6339_v47 = vld [vmem:[#allocation194_spill] sm:$0xff] }
 0x17d   :  { %6329 = vst [vmem:[#allocation173_spill] sm:$0xff] %v5144_v5  ;;  %v5156_v28 = vadd.f32 %v6335_v31, %v6334_v19  ;;  %v5160_v63 = vadd.f32 %v4612_v43, %v6336_v11  ;;  %v6338_v14 = vld [vmem:[#allocation155_spill] sm:$0xff]  ;;  %v6340_v57 = vld [vmem:[#allocation22_spill] sm:$0xff]  ;;  %v6342_v56 = vld [vmem:[#allocation156_spill] sm:$0xff] }
 0x17e   :  { %6333 = vst [vmem:[#allocation118_spill] sm:$0xff] %v5152_v23  ;;  %v5164_v55 = vadd.f32 %v6339_v47, %v6338_v14  ;;  %v5168_v22 = vadd.f32 %v4622_v37, %v6340_v57  ;;  %v6343_v5 = vld [vmem:[#allocation195_spill] sm:$0xff]  ;;  %v6346_v19 = vld [vmem:[#allocation157_spill] sm:$0xff]  ;;  %v6347_v23 = vld [vmem:[#allocation196_spill] sm:$0xff] }
 0x17f   :  { %6337 = vst [vmem:[#allocation62_spill] sm:$0xff] %v5160_v63  ;;  %v5172_v32 = vadd.f32 %v6343_v5, %v6342_v56  ;;  %v6344_v52 = vld [vmem:[#allocation23_spill] sm:$0xff]  ;;  %v5180_v43 = vadd.f32 %v6347_v23, %v6346_v19  ;;  %v6348_v11 = vld [vmem:[#allocation24_spill] sm:$0xff]  ;;  %v6350_v14 = vld [vmem:[#allocation158_spill] sm:$0xff] }
 0x180   :  { %6341 = vst [vmem:[#allocation119_spill] sm:$0xff] %v5168_v22  ;;  %v5176_v31 = vadd.f32 %v4632_v25, %v6344_v52  ;;  %v5184_v47 = vadd.f32 %v4642_v2, %v6348_v11  ;;  %v6351_v63 = vld [vmem:[#allocation197_spill] sm:$0xff]  ;;  %v6354_v56 = vld [vmem:[#allocation159_spill] sm:$0xff]  ;;  %v6355_v22 = vld [vmem:[#allocation198_spill] sm:$0xff] }
 0x181   :  { %v5188_v37 = vadd.f32 %v6351_v63, %v6350_v14  ;;  %v6352_v57 = vld [vmem:[#allocation25_spill] sm:$0xff]  ;;  %v5196_v25 = vadd.f32 %v6355_v22, %v6354_v56  ;;  %v6356_v52 = vld [vmem:[#allocation26_spill] sm:$0xff]  ;;  %v6358_v19 = vld [vmem:[#allocation160_spill] sm:$0xff] }
 0x182   :  { %6345 = vst [vmem:[#allocation174_spill] sm:$0xff] %v5176_v31  ;;  %6349 = vst [vmem:[#allocation120_spill] sm:$0xff] %v5184_v47  ;;  %v5192_v5 = vadd.f32 %v4652_v61, %v6352_v57  ;;  %v5200_v23 = vadd.f32 %v4662_v48, %v6356_v52  ;;  %v6359_v31 = vld [vmem:[#allocation199_spill] sm:$0xff]  ;;  %v6362_v14 = vld [vmem:[#allocation161_spill] sm:$0xff] }
 0x183   :  { %v5204_v2 = vadd.f32 %v6359_v31, %v6358_v19  ;;  %v6360_v11 = vld [vmem:[#allocation27_spill] sm:$0xff]  ;;  %v6363_v47 = vld [vmem:[#allocation200_spill] sm:$0xff]  ;;  %v6366_v56 = vld [vmem:[#allocation162_spill] sm:$0xff] }
 0x184   :  { %6353 = vst [vmem:[#allocation63_spill] sm:$0xff] %v5192_v5  ;;  %6357 = vst [vmem:[#allocation121_spill] sm:$0xff] %v5200_v23  ;;  %v5208_v63 = vadd.f32 %v4672_v51, %v6360_v11  ;;  %v5212_v61 = vadd.f32 %v6363_v47, %v6362_v14  ;;  %v6364_v57 = vld [vmem:[#allocation28_spill] sm:$0xff]  ;;  %v6367_v5 = vld [vmem:[#allocation201_spill] sm:$0xff] }
 0x185   :  { %v5216_v22 = vadd.f32 %v4682_v35, %v6364_v57  ;;  %v5220_v48 = vadd.f32 %v6367_v5, %v6366_v56  ;;  %v6368_v52 = vld [vmem:[#allocation29_spill] sm:$0xff]  ;;  %v6370_v19 = vld [vmem:[#allocation163_spill] sm:$0xff]  ;;  %v6371_v23 = vld [vmem:[#allocation202_spill] sm:$0xff] }
 0x186   :  { %6361 = vst [vmem:[#allocation175_spill] sm:$0xff] %v5208_v63  ;;  %v5224_v31 = vadd.f32 %v4692_v20, %v6368_v52  ;;  %v5228_v51 = vadd.f32 %v6371_v23, %v6370_v19  ;;  %v6372_v11 = vld [vmem:[#allocation30_spill] sm:$0xff]  ;;  %v6374_v14 = vld [vmem:[#allocation164_spill] sm:$0xff]  ;;  %v6375_v63 = vld [vmem:[#allocation203_spill] sm:$0xff] }
 0x187   :  { %6365 = vst [vmem:[#allocation122_spill] sm:$0xff] %v5216_v22  ;;  %v5232_v47 = vadd.f32 %v4702_v36, %v6372_v11  ;;  %v5236_v35 = vadd.f32 %v6375_v63, %v6374_v14  ;;  %v6376_v57 = vld [vmem:[#allocation31_spill] sm:$0xff]  ;;  %v6378_v56 = vld [vmem:[#allocation165_spill] sm:$0xff]  ;;  %v6379_v22 = vld [vmem:[#allocation204_spill] sm:$0xff] }
 0x188   :  { %6369 = vst [vmem:[#allocation64_spill] sm:$0xff] %v5224_v31  ;;  %v5240_v5 = vadd.f32 %v4712_v10, %v6376_v57  ;;  %v5244_v20 = vadd.f32 %v6379_v22, %v6378_v56  ;;  %v6380_v52 = vld [vmem:[#allocation32_spill] sm:$0xff]  ;;  %v6382_v19 = vld [vmem:[#allocation166_spill] sm:$0xff]  ;;  %v6383_v31 = vld [vmem:[#allocation205_spill] sm:$0xff] }
 0x189   :  { %6373 = vst [vmem:[#allocation123_spill] sm:$0xff] %v5232_v47  ;;  %v5248_v23 = vadd.f32 %v4722_v9, %v6380_v52  ;;  %v5252_v36 = vadd.f32 %v6383_v31, %v6382_v19  ;;  %v6384_v11 = vld [vmem:[#allocation33_spill] sm:$0xff]  ;;  %v6386_v14 = vld [vmem:[#allocation167_spill] sm:$0xff]  ;;  %v6387_v47 = vld [vmem:[#allocation206_spill] sm:$0xff] }
 0x18a   :  { %6377 = vst [vmem:[#allocation176_spill] sm:$0xff] %v5240_v5  ;;  %v5256_v63 = vadd.f32 %v4732_v33, %v6384_v11  ;;  %v5260_v10 = vadd.f32 %v6387_v47, %v6386_v14  ;;  %v6389_v57 = vld [vmem:[#allocation34_spill] sm:$0xff]  ;;  %v6391_v56 = vld [vmem:[#allocation168_spill] sm:$0xff]  ;;  %v6392_v5 = vld [vmem:[#allocation207_spill] sm:$0xff] }
 0x18b   :  { %6381 = vst [vmem:[#allocation124_spill] sm:$0xff] %v5248_v23  ;;  %v5264_v22 = vadd.f32 %v4742_v59, %v6389_v57  ;;  %v5268_v9 = vadd.f32 %v6392_v5, %v6391_v56  ;;  %v6393_v52 = vld [vmem:[#allocation35_spill] sm:$0xff]  ;;  %v6395_v19 = vld [vmem:[#allocation169_spill] sm:$0xff]  ;;  %v6396_v23 = vld [vmem:[#allocation208_spill] sm:$0xff] }
 0x18c   :  { %6385 = vst [vmem:[#allocation65_spill] sm:$0xff] %v5256_v63  ;;  %6388 = vst [vmem:[#allocation125_spill] sm:$0xff] %v5260_v10  ;;  %v5272_v31 = vadd.f32 %v4752_v0, %v6393_v52  ;;  %v5276_v33 = vadd.f32 %v6396_v23, %v6395_v19  ;;  %v6397_v11 = vld [vmem:[#allocation36_spill] sm:$0xff]  ;;  %v6398_v63 = vld [vmem:[#allocation209_spill] sm:$0xff] }
 0x18d   :  { %6390 = vst [vmem:[#allocation177_spill] sm:$0xff] %v5264_v22  ;;  %v5280_v47 = vadd.f32 %v6398_v63, %v6397_v11  ;;  %v6399_v14 = vld [vmem:[#allocation170_spill] sm:$0xff]  ;;  %v6401_v57 = vld [vmem:[#allocation37_spill] sm:$0xff]  ;;  %v6402_v22 = vld [vmem:[#allocation211_spill] sm:$0xff]  ;;  %v2039_v11 = vcombine.low %v4800_v60, %v4804_v50 }
 0x18e   :  { %6394 = vst [vmem:[#allocation126_spill] sm:$0xff] %v5272_v31  ;;  %v6400_v10 = vld [vmem:[#allocation210_spill] sm:$0xff]  ;;  %v5288_v5 = vadd.f32 %v6402_v22, %v6401_v57  ;;  %v6403_v56 = vld [vmem:[#allocation171_spill] sm:$0xff]  ;;  %v6405_v31 = vld [vmem:[#allocation212_spill] sm:$0xff]  ;;  %v2055_v22 = vcombine.low %v4808_v15, %v4812_v46  ;;  %v2123_v57 = vcombine.low %v4872_v1, %v4876_v24 }
 0x18f   :  { %v5284_v59 = vadd.f32 %v6400_v10, %v6399_v14  ;;  %v5292_v0 = vadd.f32 %v4778_v40, %v6403_v56  ;;  %v6404_v52 = vld [vmem:[#allocation38_spill] sm:$0xff]  ;;  %v6406_v19 = vld [vmem:[#allocation172_spill] sm:$0xff]  ;;  %v2038_v10 = vcombine.low %v4792_v41, %v4796_v53  ;;  %v2056_v40 = vcombine.low %v4816_v49, %v4820_v54  ;;  %v6407_v41 = vld [vmem:[#allocation11_spill] sm:$0xff] }
 0x190   :  { %v5296_v23 = vadd.f32 %v6405_v31, %v6404_v52  ;;  %v5300_v63 = vadd.f32 %v4788_v26, %v6406_v19  ;;  %v2072_v31 = vcombine.low %v4824_v38, %v4828_v44  ;;  %v2073_v14 = vcombine.low %v4832_v58, %v4836_v34  ;;  %v6410_v1 = vld [vmem:[#allocation87_spill] sm:$0xff]  ;;  %v6411_v24 = vld [vmem:[#allocation86_spill] sm:$0xff] }
 0x191   :  { %v2089_v26 = vcombine.low %v4840_v30, %v4844_v3  ;;  %v2090_v53 = vcombine.low %v4848_v17, %v4852_v45  ;;  %v2046_v50 = vrot.slane %v2038_v10, %v6407_v41  ;;  %v2053_v60 = vrot.slane %v2039_v11, %v6407_v41  ;;  %v6408_v11 = vld [vmem:[#allocation85_spill] sm:$0xff] }
 0x192   :  { %v2063_v15 = vrot.slane %v2055_v22, %v6407_v41  ;;  %v2070_v46 = vrot.slane %v2056_v40, %v6407_v41  ;;  %v2080_v49 = vrot.slane %v2072_v31, %v6407_v41  ;;  %v2087_v54 = vrot.slane %v2073_v14, %v6407_v41  ;;  %v6414_v14 = vld [vmem:[#allocation91_spill] sm:$0xff] }
 0x193   :  { %v2097_v38 = vrot.slane %v2089_v26, %v6407_v41  ;;  %v2104_v44 = vrot.slane %v2090_v53, %v6407_v41  ;;  %v2054_v58 = vcombine.low %v2046_v50, %v2053_v60  ;;  %v2106_v30 = vcombine.low %v4856_v12, %v4860_v62  ;;  %v6409_v12 = vld [vmem:[#allocation84_spill] sm:$0xff]  ;;  %v6415_v26 = vld [vmem:[#allocation90_spill] sm:$0xff] }
 0x194   :  { %v2071_v34 = vcombine.low %v2063_v15, %v2070_v46  ;;  %v2107_v3 = vcombine.low %v4864_v6, %v4868_v18  ;;  %v2088_v17 = vcombine.low %v2080_v49, %v2087_v54  ;;  %v2124_v56 = vcombine.low %v4880_v29, %v4884_v21  ;;  %v6412_v29 = vld [vmem:[#allocation89_spill] sm:$0xff]  ;;  %v6413_v21 = vld [vmem:[#allocation88_spill] sm:$0xff] }
 0x195   :  { %v2105_v45 = vcombine.low %v2097_v38, %v2104_v44  ;;  %v2114_v52 = vrot.slane %v2106_v30, %v6407_v41  ;;  %v2140_v10 = vcombine.low %v4888_v16, %v4892_v27  ;;  %v2141_v62 = vcombine.low %v6409_v12, %v6408_v11  ;;  %2614 = vst [vmem:[#allocation7] sm:$0xff] %v2054_v58  ;;  %v6416_v46 = vld [vmem:[#allocation93_spill] sm:$0xff]  ;;  %v6417_v49 = vld [vmem:[#allocation92_spill] sm:$0xff]  ;;  %v6418_v58 = vld [vmem:[#allocation39_spill] sm:$0xff] }
 0x196   :  { %v2121_v19 = vrot.slane %v2107_v3, %v6407_v41  ;;  %2615 = vst [vmem:[#allocation7 + $0x8] sm:$0xff] %v2071_v34  ;;  %v2131_v6 = vrot.slane %v2123_v57, %v6407_v41  ;;  %v2138_v18 = vrot.slane %v2124_v56, %v6407_v41  ;;  %v2157_v22 = vcombine.low %v6411_v24, %v6410_v1  ;;  %v6419_v34 = vld [vmem:[#allocation94_spill] sm:$0xff]  ;;  %v6420_v3 = vld [vmem:[#allocation40_spill] sm:$0xff]  ;;  %v6425_v12 = vld [vmem:[#allocation97_spill] sm:$0xff] }
 0x197   :  { %v2158_v40 = vcombine.low %v6413_v21, %v6412_v29  ;;  %2616 = vst [vmem:[#allocation7 + $0x10] sm:$0xff] %v2088_v17  ;;  %2617 = vst [vmem:[#allocation7 + $0x18] sm:$0xff] %v2105_v45  ;;  %v2148_v16 = vrot.slane %v2140_v10, %v6407_v41  ;;  %v2155_v27 = vrot.slane %v2141_v62, %v6407_v41  ;;  %v6421_v17 = vld [vmem:[#allocation95_spill] sm:$0xff]  ;;  %v6424_v11 = vld [vmem:[#allocation42_spill] sm:$0xff] }
 0x198   :  { %v2122_v31 = vcombine.low %v2114_v52, %v2121_v19  ;;  %v2174_v53 = vcombine.low %v6415_v26, %v6414_v14  ;;  %v2139_v50 = vcombine.low %v2131_v6, %v2138_v18  ;;  %v2165_v60 = vrot.slane %v2157_v22, %v6407_v41  ;;  %v6422_v52 = vld [vmem:[#allocation41_spill] sm:$0xff]  ;;  %v6423_v19 = vld [vmem:[#allocation96_spill] sm:$0xff]  ;;  %v6426_v1 = vld [vmem:[#allocation43_spill] sm:$0xff] }
 0x199   :  { %v2172_v15 = vrot.slane %v2158_v40, %v6407_v41  ;;  %v2175_v54 = vcombine.low %v6417_v49, %v6416_v46  ;;  %v2156_v38 = vcombine.low %v2148_v16, %v2155_v27  ;;  %v2191_v30 = vcombine.low %v6419_v34, %v6418_v58  ;;  %v6427_v24 = vld [vmem:[#allocation98_spill] sm:$0xff]  ;;  %v6428_v29 = vld [vmem:[#allocation44_spill] sm:$0xff]  ;;  %v6429_v21 = vld [vmem:[#allocation99_spill] sm:$0xff] }
 0x19a   :  { %v2182_v44 = vrot.slane %v2174_v53, %v6407_v41  ;;  %v2192_v45 = vcombine.low %v6421_v17, %v6420_v3  ;;  %2618 = vst [vmem:[#allocation7 + $0x20] sm:$0xff] %v2122_v31  ;;  %v2208_v10 = vcombine.low %v6423_v19, %v6422_v52  ;;  %v2209_v62 = vcombine.low %v6425_v12, %v6424_v11  ;;  %v6430_v14 = vld [vmem:[#allocation45_spill] sm:$0xff]  ;;  %v6431_v26 = vld [vmem:[#allocation100_spill] sm:$0xff]  ;;  %v6432_v46 = vld [vmem:[#allocation46_spill] sm:$0xff] }
 0x19b   :  { %v2173_v57 = vcombine.low %v2165_v60, %v2172_v15  ;;  %v2189_v56 = vrot.slane %v2175_v54, %v6407_v41  ;;  %2619 = vst [vmem:[#allocation7 + $0x28] sm:$0xff] %v2139_v50  ;;  %v2199_v6 = vrot.slane %v2191_v30, %v6407_v41  ;;  %v2225_v22 = vcombine.low %v6427_v24, %v6426_v1  ;;  %v6433_v49 = vld [vmem:[#allocation101_spill] sm:$0xff]  ;;  %v6435_v34 = vld [vmem:[#allocation102_spill] sm:$0xff]  ;;  %v6436_v3 = vld [vmem:[#allocation48_spill] sm:$0xff] }
 0x19c   :  { %v2206_v18 = vrot.slane %v2192_v45, %v6407_v41  ;;  %v2226_v40 = vcombine.low %v6429_v21, %v6428_v29  ;;  %2620 = vst [vmem:[#allocation7 + $0x30] sm:$0xff] %v2156_v38  ;;  %v2216_v16 = vrot.slane %v2208_v10, %v6407_v41  ;;  %v2223_v27 = vrot.slane %v2209_v62, %v6407_v41  ;;  %v6437_v17 = vld [vmem:[#allocation103_spill] sm:$0xff]  ;;  %v6438_v52 = vld [vmem:[#allocation49_spill] sm:$0xff]  ;;  %v6439_v19 = vld [vmem:[#allocation104_spill] sm:$0xff] }
 0x19d   :  { %v2190_v31 = vcombine.low %v2182_v44, %v2189_v56  ;;  %v2242_v53 = vcombine.low %v6431_v26, %v6430_v14  ;;  %2621 = vst [vmem:[#allocation7 + $0x38] sm:$0xff] %v2173_v57  ;;  %v2233_v60 = vrot.slane %v2225_v22, %v6407_v41  ;;  %v2243_v54 = vcombine.low %v6433_v49, %v6432_v46  ;;  %v6434_v44 = vld [vmem:[#allocation47_spill] sm:$0xff]  ;;  %v6440_v11 = vld [vmem:[#allocation50_spill] sm:$0xff]  ;;  %v6441_v12 = vld [vmem:[#allocation105_spill] sm:$0xff] }
 0x19e   :  { %v2207_v50 = vcombine.low %v2199_v6, %v2206_v18  ;;  %v2240_v15 = vrot.slane %v2226_v40, %v6407_v41  ;;  %v2224_v58 = vcombine.low %v2216_v16, %v2223_v27  ;;  %v2259_v30 = vcombine.low %v6435_v34, %v6434_v44  ;;  %v6442_v1 = vld [vmem:[#allocation51_spill] sm:$0xff]  ;;  %v6443_v24 = vld [vmem:[#allocation106_spill] sm:$0xff]  ;;  %v6444_v29 = vld [vmem:[#allocation52_spill] sm:$0xff] }
 0x19f   :  { %v2250_v38 = vrot.slane %v2242_v53, %v6407_v41  ;;  %v2260_v45 = vcombine.low %v6437_v17, %v6436_v3  ;;  %2622 = vst [vmem:[#allocation7 + $0x40] sm:$0xff] %v2190_v31  ;;  %v2257_v57 = vrot.slane %v2243_v54, %v6407_v41  ;;  %v2276_v10 = vcombine.low %v6439_v19, %v6438_v52  ;;  %v6445_v21 = vld [vmem:[#allocation107_spill] sm:$0xff]  ;;  %v6446_v14 = vld [vmem:[#allocation53_spill] sm:$0xff]  ;;  %v6447_v26 = vld [vmem:[#allocation108_spill] sm:$0xff] }
 0x1a0   :  { %v2241_v56 = vcombine.low %v2233_v60, %v2240_v15  ;;  %v2277_v62 = vcombine.low %v6441_v12, %v6440_v11  ;;  %2623 = vst [vmem:[#allocation7 + $0x48] sm:$0xff] %v2207_v50  ;;  %v2267_v6 = vrot.slane %v2259_v30, %v6407_v41  ;;  %v2293_v22 = vcombine.low %v6443_v24, %v6442_v1  ;;  %v6448_v46 = vld [vmem:[#allocation54_spill] sm:$0xff]  ;;  %v6449_v49 = vld [vmem:[#allocation109_spill] sm:$0xff]  ;;  %v6452_v3 = vld [vmem:[#allocation56_spill] sm:$0xff] }
 0x1a1   :  { %v2274_v18 = vrot.slane %v2260_v45, %v6407_v41  ;;  %v2294_v40 = vcombine.low %v6445_v21, %v6444_v29  ;;  %2624 = vst [vmem:[#allocation7 + $0x50] sm:$0xff] %v2224_v58  ;;  %v2258_v31 = vcombine.low %v2250_v38, %v2257_v57  ;;  %v2284_v16 = vrot.slane %v2276_v10, %v6407_v41  ;;  %v6450_v38 = vld [vmem:[#allocation55_spill] sm:$0xff]  ;;  %v6451_v34 = vld [vmem:[#allocation110_spill] sm:$0xff]  ;;  %v6454_v52 = vld [vmem:[#allocation57_spill] sm:$0xff] }
 0x1a2   :  { %v2291_v27 = vrot.slane %v2277_v62, %v6407_v41  ;;  %v2310_v53 = vcombine.low %v6447_v26, %v6446_v14  ;;  %2625 = vst [vmem:[#allocation7 + $0x58] sm:$0xff] %v2241_v56  ;;  %v2301_v60 = vrot.slane %v2293_v22, %v6407_v41  ;;  %v2311_v54 = vcombine.low %v6449_v49, %v6448_v46  ;;  %v6453_v17 = vld [vmem:[#allocation111_spill] sm:$0xff]  ;;  %v6455_v19 = vld [vmem:[#allocation112_spill] sm:$0xff]  ;;  %v6456_v11 = vld [vmem:[#allocation58_spill] sm:$0xff] }
 0x1a3   :  { %v2275_v50 = vcombine.low %v2267_v6, %v2274_v18  ;;  %v2308_v15 = vrot.slane %v2294_v40, %v6407_v41  ;;  %v2327_v30 = vcombine.low %v6451_v34, %v6450_v38  ;;  %v2328_v45 = vcombine.low %v6453_v17, %v6452_v3  ;;  %2626 = vst [vmem:[#allocation7 + $0x60] sm:$0xff] %v2258_v31  ;;  %v6457_v12 = vld [vmem:[#allocation113_spill] sm:$0xff]  ;;  %v6458_v1 = vld [vmem:[#allocation114_spill] sm:$0xff]  ;;  %v6459_v22 = vld [vmem:[#allocation115_spill] sm:$0xff] }
 0x1a4   :  { %v2292_v44 = vcombine.low %v2284_v16, %v2291_v27  ;;  %v2318_v58 = vrot.slane %v2310_v53, %v6407_v41  ;;  %v2325_v56 = vrot.slane %v2311_v54, %v6407_v41  ;;  %v2344_v10 = vcombine.low %v6455_v19, %v6454_v52  ;;  %v6460_v29 = vld [vmem:[#allocation59_spill] sm:$0xff]  ;;  %v6461_v27 = vld [vmem:[#allocation60_spill] sm:$0xff]  ;;  %v6463_v49 = vld [vmem:[#allocation61_spill] sm:$0xff] }
 0x1a5   :  { %v2309_v57 = vcombine.low %v2301_v60, %v2308_v15  ;;  %v2345_v62 = vcombine.low %v6457_v12, %v6456_v11  ;;  %2627 = vst [vmem:[#allocation7 + $0x68] sm:$0xff] %v2275_v50  ;;  %v2335_v6 = vrot.slane %v2327_v30, %v6407_v41  ;;  %v2342_v18 = vrot.slane %v2328_v45, %v6407_v41  ;;  %v6465_v34 = vld [vmem:[#allocation173_spill] sm:$0xff]  ;;  %v6466_v3 = vld [vmem:[#allocation118_spill] sm:$0xff] }
 0x1a6   :  { %v2361_v24 = vcombine.low %v6458_v1, %v5100_v4  ;;  %v2362_v21 = vcombine.low %v6460_v29, %v6459_v22  ;;  %2628 = vst [vmem:[#allocation7 + $0x70] sm:$0xff] %v2292_v44  ;;  %v2326_v40 = vcombine.low %v2318_v58, %v2325_v56  ;;  %v2352_v31 = vrot.slane %v2344_v10, %v6407_v41  ;;  %v6462_v4 = vld [vmem:[#allocation116_spill] sm:$0xff]  ;;  %v6464_v44 = vld [vmem:[#allocation117_spill] sm:$0xff]  ;;  %v6469_v10 = vld [vmem:[#allocation174_spill] sm:$0xff] }
 0x1a7   :  { %v2359_v16 = vrot.slane %v2345_v62, %v6407_v41  ;;  %v2378_v14 = vcombine.low %v6461_v27, %v5116_v7  ;;  %2629 = vst [vmem:[#allocation7 + $0x78] sm:$0xff] %v2309_v57  ;;  %v2343_v26 = vcombine.low %v2335_v6, %v2342_v18  ;;  %v2379_v60 = vcombine.low %v6462_v4, %v5124_v13  ;;  %v6471_v1 = vld [vmem:[#allocation63_spill] sm:$0xff]  ;;  %v6472_v22 = vld [vmem:[#allocation121_spill] sm:$0xff] }
 0x1a8   :  { %v2369_v53 = vrot.slane %v2361_v24, %v6407_v41  ;;  %v2376_v50 = vrot.slane %v2362_v21, %v6407_v41  ;;  %v2395_v54 = vcombine.low %v6463_v49, %v5132_v8  ;;  %v2396_v58 = vcombine.low %v6464_v44, %v5140_v42  ;;  %2630 = vst [vmem:[#allocation7 + $0x80] sm:$0xff] %v2326_v40  ;;  %v6467_v8 = vld [vmem:[#allocation62_spill] sm:$0xff]  ;;  %v6468_v42 = vld [vmem:[#allocation119_spill] sm:$0xff] }
 0x1a9   :  { %v2360_v15 = vcombine.low %v2352_v31, %v2359_v16  ;;  %v2386_v46 = vrot.slane %v2378_v14, %v6407_v41  ;;  %v2393_v38 = vrot.slane %v2379_v60, %v6407_v41  ;;  %v2412_v30 = vcombine.low %v6465_v34, %v5148_v39  ;;  %2631 = vst [vmem:[#allocation7 + $0x88] sm:$0xff] %v2343_v26  ;;  %v6473_v40 = vld [vmem:[#allocation175_spill] sm:$0xff]  ;;  %v6474_v16 = vld [vmem:[#allocation122_spill] sm:$0xff]  ;;  %v6477_v60 = vld [vmem:[#allocation176_spill] sm:$0xff] }
 0x1aa   :  { %v2377_v7 = vcombine.low %v2369_v53, %v2376_v50  ;;  %v2413_v17 = vcombine.low %v6466_v3, %v5156_v28  ;;  %v2403_v13 = vrot.slane %v2395_v54, %v6407_v41  ;;  %v2410_v45 = vrot.slane %v2396_v58, %v6407_v41  ;;  %v6479_v58 = vld [vmem:[#allocation125_spill] sm:$0xff] }
 0x1ab   :  { %v2429_v57 = vcombine.low %v6467_v8, %v5164_v55  ;;  %v2430_v56 = vcombine.low %v6468_v42, %v5172_v32  ;;  %2632 = vst [vmem:[#allocation7 + $0x90] sm:$0xff] %v2360_v15  ;;  %v2394_v52 = vcombine.low %v2386_v46, %v2393_v38  ;;  %v2420_v19 = vrot.slane %v2412_v30, %v6407_v41  ;;  %v6470_v55 = vld [vmem:[#allocation120_spill] sm:$0xff]  ;;  %v6481_v34 = vld [vmem:[#allocation177_spill] sm:$0xff] }
 0x1ac   :  { %v2427_v39 = vrot.slane %v2413_v17, %v6407_v41  ;;  %v2446_v28 = vcombine.low %v6469_v10, %v5180_v43  ;;  %2633 = vst [vmem:[#allocation7 + $0x98] sm:$0xff] %v2377_v7  ;;  %v2411_v11 = vcombine.low %v2403_v13, %v2410_v45  ;;  %v2447_v6 = vcombine.low %v6470_v55, %v5188_v37  ;;  %v6480_v7 = vld [vmem:[#allocation65_spill] sm:$0xff]  ;;  %v6482_v17 = vld [vmem:[#allocation126_spill] sm:$0xff] }
 0x1ad   :  { %v2437_v12 = vrot.slane %v2429_v57, %v6407_v41  ;;  %v2444_v62 = vrot.slane %v2430_v56, %v6407_v41  ;;  %v2463_v24 = vcombine.low %v6471_v1, %v5196_v25  ;;  %v2464_v29 = vcombine.low %v6472_v22, %v5204_v2  ;;  %2634 = vst [vmem:[#allocation7 + $0xa0] sm:$0xff] %v2394_v52  ;;  %v6475_v25 = vld [vmem:[#allocation64_spill] sm:$0xff]  ;;  %v6476_v2 = vld [vmem:[#allocation123_spill] sm:$0xff] }
 0x1ae   :  { %v2428_v18 = vcombine.low %v2420_v19, %v2427_v39  ;;  %v2454_v32 = vrot.slane %v2446_v28, %v6407_v41  ;;  %v2461_v21 = vrot.slane %v2447_v6, %v6407_v41  ;;  %v2480_v31 = vcombine.low %v6473_v40, %v5212_v61  ;;  %2635 = vst [vmem:[#allocation7 + $0xa8] sm:$0xff] %v2411_v11 }
 0x1af   :  { %v2445_v43 = vcombine.low %v2437_v12, %v2444_v62  ;;  %v2481_v27 = vcombine.low %v6474_v16, %v5220_v48  ;;  %v2471_v37 = vrot.slane %v2463_v24, %v6407_v41  ;;  %v2478_v14 = vrot.slane %v2464_v29, %v6407_v41 }
 0x1b0   :  { %v2497_v26 = vcombine.low %v6475_v25, %v5228_v51  ;;  %v2498_v53 = vcombine.low %v6476_v2, %v5236_v35  ;;  %2636 = vst [vmem:[#allocation7 + $0xb0] sm:$0xff] %v2428_v18  ;;  %v2462_v50 = vcombine.low %v2454_v32, %v2461_v21  ;;  %v2488_v4 = vrot.slane %v2480_v31, %v6407_v41  ;;  %v6478_v51 = vld [vmem:[#allocation124_spill] sm:$0xff] }
 0x1b1   :  { %v2495_v61 = vrot.slane %v2481_v27, %v6407_v41  ;;  %v2514_v48 = vcombine.low %v6477_v60, %v5244_v20  ;;  %2637 = vst [vmem:[#allocation7 + $0xb8] sm:$0xff] %v2445_v43  ;;  %v2479_v15 = vcombine.low %v2471_v37, %v2478_v14  ;;  %v2515_v54 = vcombine.low %v6478_v51, %v5252_v36 }
 0x1b2   :  { %v2505_v46 = vrot.slane %v2497_v26, %v6407_v41  ;;  %v2512_v49 = vrot.slane %v2498_v53, %v6407_v41  ;;  %v2531_v38 = vcombine.low %v6480_v7, %v6479_v58  ;;  %v2532_v30 = vcombine.low %v6481_v34, %v5268_v9  ;;  %2638 = vst [vmem:[#allocation7 + $0xc0] sm:$0xff] %v2462_v50 }
 0x1b3   :  { %v2496_v44 = vcombine.low %v2488_v4, %v2495_v61  ;;  %v2522_v35 = vrot.slane %v2514_v48, %v6407_v41  ;;  %v2529_v3 = vrot.slane %v2515_v54, %v6407_v41  ;;  %v2548_v13 = vcombine.low %v6482_v17, %v5276_v33  ;;  %2639 = vst [vmem:[#allocation7 + $0xc8] sm:$0xff] %v2479_v15 }
 0x1b4   :  { %v2513_v20 = vcombine.low %v2505_v46, %v2512_v49  ;;  %v2549_v45 = vcombine.low %v5280_v47, %v5284_v59  ;;  %v2539_v36 = vrot.slane %v2531_v38, %v6407_v41  ;;  %v2546_v8 = vrot.slane %v2532_v30, %v6407_v41 }
 0x1b5   :  { %v2565_v57 = vcombine.low %v5288_v5, %v5292_v0  ;;  %v2566_v9 = vcombine.low %v5296_v23, %v5300_v63  ;;  %2640 = vst [vmem:[#allocation7 + $0xd0] sm:$0xff] %v2496_v44  ;;  %v2530_v42 = vcombine.low %v2522_v35, %v2529_v3  ;;  %v2556_v56 = vrot.slane %v2548_v13, %v6407_v41 }
 0x1b6   :  { %v2563_v33 = vrot.slane %v2549_v45, %v6407_v41  ;;  %2641 = vst [vmem:[#allocation7 + $0xd8] sm:$0xff] %v2513_v20  ;;  %v2547_v47 = vcombine.low %v2539_v36, %v2546_v8 }
 0x1b7   :  { %v2573_v59 = vrot.slane %v2565_v57, %v6407_v41  ;;  %v2580_v52 = vrot.slane %v2566_v9, %v6407_v41  ;;  %2642 = vst [vmem:[#allocation7 + $0xe0] sm:$0xff] %v2530_v42 }
 0x1b8   :  { %v2564_v19 = vcombine.low %v2556_v56, %v2563_v33  ;;  %2643 = vst [vmem:[#allocation7 + $0xe8] sm:$0xff] %v2547_v47 }
 0x1b9   :  { %v2581_v5 = vcombine.low %v2573_v59, %v2580_v52 }
 0x1ba   :  { %2644 = vst [vmem:[#allocation7 + $0xf0] sm:$0xff] %v2564_v19 }
 0x1bb   :  { %2645 = vst [vmem:[#allocation7 + $0xf8] sm:$0xff] %v2581_v5 }
 0x1bc   :  { %2787 = shalt.err (!%p2784_p6)
}
 0x1bd   :  { %s2788_s18 = scalar_lea.hbm %s5510_s4, 4096 }
 0x1be   :  { %p2789_p7 = scmp.ne.s32.totalorder %s5510_s4, %s2788_s18  ;;  %p2792_p8 = scmp.lt.u32.totalorder %s2788_s18, %s5510_s4 }
 0x1c0   :  { %p2794_p9 = pnand %p2792_p8, %p2789_p7 }
 0x1c2   :  { %2797 = shalt.err (!%p2794_p9)
}
 0x1c3   :  { %2655 = dma.vmem_to_hbm [thread:$0]  %s2653_s2, 4096, %s5510_s4, [#allocation4]  }
 0x1c4   :  { %2802 = dma.done.wait [#allocation4], 4096  }
 0x1c5   :  { %2803 = vsyncadd [#allocation4], 4294963200 }
 0x1c6   :  { %2659 = vsyncpa [#allocation3], 1 }
 0x1c7   :  { %2660 = vsyncpa [#allocation6], 1 }
 0x1c8   :  { %2661 = vsyncpa [#allocation4], 1 }

</bundles_post_ra>
